<compile_context>
chip_gen: v7x
topology: tpu7x:2x2x1
jax: 0.10.0
libtpu: 0.0.40
codegen_flags: <defaults>
</compile_context>

<pallas_src>
import jax
import jax.numpy as jnp
from jax import lax
from jax.experimental import pallas as pl
from jax.experimental.pallas import tpu as pltpu

BN_EPS = 1e-5


def _expand_conv_weight(w_oidhw, H, W):
    """Expand a PyTorch (C_out, C_in, 3, 3, 3) conv weight into banded matrices.

    Returns (3, C_in*H*W, C_out*H*W): one dense matrix per depth tap kd, where
      Wbig[kd, ci*H*W + h'*W + w', co*H*W + h*W + w]
        = w[co, ci, kd, h'-h+1, w'-w+1]   if both offsets are in [0, 2]
        = 0                               otherwise (encodes 'same' padding).
    """
    C_out, C_in, KD, KH, KW = w_oidhw.shape
    w_k = jnp.transpose(w_oidhw, (2, 3, 4, 1, 0))  # (kd, kh, kw, ci, co)

    dh = jnp.arange(H)[:, None] - jnp.arange(H)[None, :] + 1  # (H', H)
    dw = jnp.arange(W)[:, None] - jnp.arange(W)[None, :] + 1  # (W', W)
    vh = (dh >= 0) & (dh <= KH - 1)
    vw = (dw >= 0) & (dw <= KW - 1)
    dhc = jnp.clip(dh, 0, KH - 1)
    dwc = jnp.clip(dw, 0, KW - 1)

    # T[kd, h', h, w', w, ci, co] = w_k[kd, dh(h',h), dw(w',w), ci, co]
    T = w_k[:, dhc[:, :, None, None], dwc[None, None, :, :], :, :]
    valid = (vh[:, :, None, None] & vw[None, None, :, :]).astype(T.dtype)
    T = T * valid[None, :, :, :, :, None, None]

    # -> (kd, ci, h', w', co, h, w) -> (kd, C_in*H*W, C_out*H*W)
    T = jnp.transpose(T, (0, 5, 1, 3, 6, 2, 4))
    return T.reshape(KD, C_in * H * W, C_out * H * W)


def simple_rb_kernel(x_ref, w1_ref, w2_ref, s1_ref, b1_ref, s2_ref, b2_ref,
                     out_ref, xp_ref):
    """Fused conv->BN->ReLU->conv->BN->(+res)->ReLU for one batch element.

    x_ref/out_ref: (1, D, CHW) lane-dense.  w*_ref: (3, CHW, CHW).
    s/b refs: (1, CHW) folded BN scale/shift.  xp_ref: (D+2, CHW) VMEM scratch
    holding the depth-padded activation (halo rows are zero).
    """
    _, D, CHW = x_ref.shape
    x = x_ref[0]  # (D, CHW) f32

    zero_row = jnp.zeros((1, CHW), jnp.float32)

    def conv3(v, w_ref):
        # Depth halo handled in-kernel: write v into the padded scratch.
        xp_ref[0:1, :] = zero_row
        xp_ref[D + 1:D + 2, :] = zero_row
        xp_ref[1:D + 1, :] = v
        # Three dense MXU matmuls, one per depth tap (K = CHW).
        acc = jnp.dot(xp_ref[0:D, :], w_ref[0],
                      preferred_element_type=jnp.float32)
        acc = acc + jnp.dot(xp_ref[1:D + 1, :], w_ref[1],
                            preferred_element_type=jnp.float32)
        acc = acc + jnp.dot(xp_ref[2:D + 2, :], w_ref[2],
                            preferred_element_type=jnp.float32)
        return acc

    y = conv3(x, w1_ref)
    y = jnp.maximum(y * s1_ref[...] + b1_ref[...], 0.0)   # BN1 + ReLU
    y = conv3(y, w2_ref)
    y = y * s2_ref[...] + b2_ref[...]                     # BN2
    out = jnp.maximum(x + y, 0.0)                         # residual + ReLU
    out_ref[...] = out[None].astype(out_ref.dtype)


def simple_rb_forward(x_ncdhw, w1, w2, scale1, shift1, scale2, shift2):
    """SimpleRB forward. Input/output in PyTorch NCDHW layout."""
    N, C, D, H, W = x_ncdhw.shape
    CHW = C * H * W

    # (N, C, D, H, W) -> (N, D, C*H*W): lane-dense flat layout for the kernel.
    x_flat = jnp.transpose(x_ncdhw, (0, 2, 1, 3, 4)).reshape(
        N, D, CHW).astype(jnp.float32)

    w1b = _expand_conv_weight(w1.astype(jnp.float32), H, W)  # (3, CHW, CHW)
    w2b = _expand_conv_weight(w2.astype(jnp.float32), H, W)

    # Broadcast per-channel BN scale/shift to the flat (c, h, w) layout.
    s1 = jnp.repeat(scale1.astype(jnp.float32), H * W)[None, :]
    b1 = jnp.repeat(shift1.astype(jnp.float32), H * W)[None, :]
    s2 = jnp.repeat(scale2.astype(jnp.float32), H * W)[None, :]
    b2 = jnp.repeat(shift2.astype(jnp.float32), H * W)[None, :]

    out_flat = pl.pallas_call(
        simple_rb_kernel,
        out_shape=jax.ShapeDtypeStruct((N, D, CHW), jnp.float32),
        grid=(N,),
        in_specs=[
            pl.BlockSpec((1, D, CHW), lambda n: (n, 0, 0)),
            pl.BlockSpec((3, CHW, CHW), lambda n: (0, 0, 0)),
            pl.BlockSpec((3, CHW, CHW), lambda n: (0, 0, 0)),
            pl.BlockSpec((1, CHW), lambda n: (0, 0)),
            pl.BlockSpec((1, CHW), lambda n: (0, 0)),
            pl.BlockSpec((1, CHW), lambda n: (0, 0)),
            pl.BlockSpec((1, CHW), lambda n: (0, 0)),
        ],
        out_specs=pl.BlockSpec((1, D, CHW), lambda n: (n, 0, 0)),
        scratch_shapes=[pltpu.VMEM((D + 2, CHW), jnp.float32)],
        compiler_params=pltpu.CompilerParams(
            dimension_semantics=("parallel",)),
    )(x_flat, w1b, w2b, s1, b1, s2, b2)

    # Back to PyTorch NCDHW.
    return jnp.transpose(out_flat.reshape(N, D, C, H, W), (0, 2, 1, 3, 4))


def ref_forward(x, w1, w2, scale1, shift1, scale2, shift2):
    """Pure-JAX reference (lax.conv) for correctness checking."""
    dn = ("NCDHW", "OIDHW", "NCDHW")

    def conv(v, w):
        return lax.conv_general_dilated(v, w, (1, 1, 1), [(1, 1)] * 3,
                                        dimension_numbers=dn)

    def affine(v, s, b):
        return v * s[None, :, None, None, None] + b[None, :, None, None, None]

    y = jax.nn.relu(affine(conv(x, w1), scale1, shift1))
    y = affine(conv(y, w2), scale2, shift2)
    return jax.nn.relu(x + y)


if __name__ == "__main__":
    N, C, D, H, W = 2, 4, 8, 8, 8
    key = jax.random.PRNGKey(0)
    ks = jax.random.split(key, 11)

    x = jax.random.normal(ks[0], (N, C, D, H, W), jnp.float32)

    # Conv3d weights: PyTorch shape (C_out, C_in, 3, 3, 3), bias=False.
    w1 = jax.random.normal(ks[1], (C, C, 3, 3, 3), jnp.float32) * 0.1
    w2 = jax.random.normal(ks[2], (C, C, 3, 3, 3), jnp.float32) * 0.1

    # BatchNorm3d params / running stats (eval mode), folded into scale/shift.
    gamma1 = 1.0 + 0.1 * jax.random.normal(ks[3], (C,), jnp.float32)
    beta1 = 0.1 * jax.random.normal(ks[4], (C,), jnp.float32)
    mean1 = 0.1 * jax.random.normal(ks[5], (C,), jnp.float32)
    var1 = jax.random.uniform(ks[6], (C,), jnp.float32, 0.5, 1.5)
    gamma2 = 1.0 + 0.1 * jax.random.normal(ks[7], (C,), jnp.float32)
    beta2 = 0.1 * jax.random.normal(ks[8], (C,), jnp.float32)
    mean2 = 0.1 * jax.random.normal(ks[9], (C,), jnp.float32)
    var2 = jax.random.uniform(ks[10], (C,), jnp.float32, 0.5, 1.5)

    scale1 = gamma1 / jnp.sqrt(var1 + BN_EPS)
    shift1 = beta1 - mean1 * scale1
    scale2 = gamma2 / jnp.sqrt(var2 + BN_EPS)
    shift2 = beta2 - mean2 * scale2

    out = simple_rb_forward(x, w1, w2, scale1, shift1, scale2, shift2)
    out = jax.block_until_ready(out)

    ref = ref_forward(x, w1, w2, scale1, shift1, scale2, shift2)
    assert out.shape == (N, C, D, H, W)
    assert jnp.allclose(out, ref, atol=1e-4, rtol=1e-4), "mismatch vs reference"

    print("KERNEL_OK")
</pallas_src>

<mosaic_0001>
module attributes {stable_mosaic.version = 11 : i64} {
  func.func @simple_rb_kernel(%arg0: i32, %arg1: memref<1x8x256xf32, #tpu.memory_space<vmem>>, %arg2: memref<3x256x256xf32, #tpu.memory_space<vmem>>, %arg3: memref<3x256x256xf32, #tpu.memory_space<vmem>>, %arg4: memref<1x256xf32, #tpu.memory_space<vmem>>, %arg5: memref<1x256xf32, #tpu.memory_space<vmem>>, %arg6: memref<1x256xf32, #tpu.memory_space<vmem>>, %arg7: memref<1x256xf32, #tpu.memory_space<vmem>>, %arg8: memref<1x8x256xf32, #tpu.memory_space<vmem>>, %arg9: memref<10x256xf32, #tpu.memory_space<vmem>>) attributes {dimension_semantics = [#tpu.dimension_semantics<parallel>], iteration_bounds = array<i64: 2>, scalar_prefetch = 0 : i64, scratch_operands = 1 : i64, tpu.core_type = #tpu.core_type<tc>, window_params = [{transform_indices = @transform_0, window_bounds = array<i64: 1, 8, 256>}, {pipeline_mode = #tpu.pipeline_mode<synchronous>, transform_indices = @transform_1, window_bounds = array<i64: 3, 256, 256>}, {pipeline_mode = #tpu.pipeline_mode<synchronous>, transform_indices = @transform_2, window_bounds = array<i64: 3, 256, 256>}, {pipeline_mode = #tpu.pipeline_mode<synchronous>, transform_indices = @transform_3, window_bounds = array<i64: 1, 256>}, {pipeline_mode = #tpu.pipeline_mode<synchronous>, transform_indices = @transform_4, window_bounds = array<i64: 1, 256>}, {pipeline_mode = #tpu.pipeline_mode<synchronous>, transform_indices = @transform_5, window_bounds = array<i64: 1, 256>}, {pipeline_mode = #tpu.pipeline_mode<synchronous>, transform_indices = @transform_6, window_bounds = array<i64: 1, 256>}, {transform_indices = @transform_7, window_bounds = array<i64: 1, 8, 256>}]} {
    %c0 = arith.constant 0 : index
    %c0_0 = arith.constant 0 : index
    %c0_1 = arith.constant 0 : index
    %0 = vector.load %arg1[%c0, %c0_0, %c0_1] : memref<1x8x256xf32, #tpu.memory_space<vmem>>, vector<1x8x256xf32>
    %1 = vector.shape_cast %0 : vector<1x8x256xf32> to vector<8x256xf32>
    %cst = arith.constant 0.000000e+00 : f32
    %2 = vector.broadcast %cst : f32 to vector<1x256xf32>
    %c0_2 = arith.constant 0 : index
    %c0_3 = arith.constant 0 : index
    %3 = vector.load %arg9[%c0_2, %c0_3] : memref<10x256xf32, #tpu.memory_space<vmem>>, vector<1x256xf32>
    tpu.vector_store %arg9[%c0_2, %c0_3], %2 {strides = array<i32>} : memref<10x256xf32, #tpu.memory_space<vmem>>, vector<1x256xf32>,
    %c9 = arith.constant 9 : index
    %c0_4 = arith.constant 0 : index
    %4 = vector.load %arg9[%c9, %c0_4] : memref<10x256xf32, #tpu.memory_space<vmem>>, vector<1x256xf32>
    tpu.vector_store %arg9[%c9, %c0_4], %2 {strides = array<i32>} : memref<10x256xf32, #tpu.memory_space<vmem>>, vector<1x256xf32>,
    %c1 = arith.constant 1 : index
    %c0_5 = arith.constant 0 : index
    %5 = vector.load %arg9[%c1, %c0_5] : memref<10x256xf32, #tpu.memory_space<vmem>>, vector<8x256xf32>
    tpu.vector_store %arg9[%c1, %c0_5], %1 {strides = array<i32>} : memref<10x256xf32, #tpu.memory_space<vmem>>, vector<8x256xf32>,
    %c0_6 = arith.constant 0 : index
    %c0_7 = arith.constant 0 : index
    %6 = vector.load %arg9[%c0_6, %c0_7] : memref<10x256xf32, #tpu.memory_space<vmem>>, vector<8x256xf32>
    %c0_8 = arith.constant 0 : index
    %c0_9 = arith.constant 0 : index
    %c0_10 = arith.constant 0 : index
    %7 = vector.load %arg2[%c0_8, %c0_9, %c0_10] : memref<3x256x256xf32, #tpu.memory_space<vmem>>, vector<1x256x256xf32>
    %8 = vector.shape_cast %7 : vector<1x256x256xf32> to vector<256x256xf32>
    %cst_11 = arith.constant dense<0.000000e+00> : vector<8x256xf32>
    %9 = tpu.matmul %6, %8, %cst_11 {dimension_numbers = #tpu.dot_dimension_numbers<[1], [0], [0], [1], [0, 0, 1, 1], [], []>} : vector<8x256xf32>, vector<256x256xf32>, vector<8x256xf32> -> vector<8x256xf32>
    %c1_12 = arith.constant 1 : index
    %c0_13 = arith.constant 0 : index
    %10 = vector.load %arg9[%c1_12, %c0_13] : memref<10x256xf32, #tpu.memory_space<vmem>>, vector<8x256xf32>
    %c1_14 = arith.constant 1 : index
    %c0_15 = arith.constant 0 : index
    %c0_16 = arith.constant 0 : index
    %11 = vector.load %arg2[%c1_14, %c0_15, %c0_16] : memref<3x256x256xf32, #tpu.memory_space<vmem>>, vector<1x256x256xf32>
    %12 = vector.shape_cast %11 : vector<1x256x256xf32> to vector<256x256xf32>
    %cst_17 = arith.constant dense<0.000000e+00> : vector<8x256xf32>
    %13 = tpu.matmul %10, %12, %cst_17 {dimension_numbers = #tpu.dot_dimension_numbers<[1], [0], [0], [1], [0, 0, 1, 1], [], []>} : vector<8x256xf32>, vector<256x256xf32>, vector<8x256xf32> -> vector<8x256xf32>
    %14 = arith.addf %9, %13 : vector<8x256xf32>
    %c2 = arith.constant 2 : index
    %c0_18 = arith.constant 0 : index
    %15 = vector.load %arg9[%c2, %c0_18] : memref<10x256xf32, #tpu.memory_space<vmem>>, vector<8x256xf32>
    %c2_19 = arith.constant 2 : index
    %c0_20 = arith.constant 0 : index
    %c0_21 = arith.constant 0 : index
    %16 = vector.load %arg2[%c2_19, %c0_20, %c0_21] : memref<3x256x256xf32, #tpu.memory_space<vmem>>, vector<1x256x256xf32>
    %17 = vector.shape_cast %16 : vector<1x256x256xf32> to vector<256x256xf32>
    %cst_22 = arith.constant dense<0.000000e+00> : vector<8x256xf32>
    %18 = tpu.matmul %15, %17, %cst_22 {dimension_numbers = #tpu.dot_dimension_numbers<[1], [0], [0], [1], [0, 0, 1, 1], [], []>} : vector<8x256xf32>, vector<256x256xf32>, vector<8x256xf32> -> vector<8x256xf32>
    %19 = arith.addf %14, %18 : vector<8x256xf32>
    %c0_23 = arith.constant 0 : index
    %c0_24 = arith.constant 0 : index
    %20 = vector.load %arg4[%c0_23, %c0_24] : memref<1x256xf32, #tpu.memory_space<vmem>>, vector<1x256xf32>
    %21 = vector.broadcast %20 : vector<1x256xf32> to vector<8x256xf32>
    %22 = arith.mulf %19, %21 : vector<8x256xf32>
    %c0_25 = arith.constant 0 : index
    %c0_26 = arith.constant 0 : index
    %23 = vector.load %arg5[%c0_25, %c0_26] : memref<1x256xf32, #tpu.memory_space<vmem>>, vector<1x256xf32>
    %24 = vector.broadcast %23 : vector<1x256xf32> to vector<8x256xf32>
    %25 = arith.addf %22, %24 : vector<8x256xf32>
    %cst_27 = arith.constant 0.000000e+00 : f32
    %26 = vector.broadcast %cst_27 : f32 to vector<8x256xf32>
    %27 = arith.maximumf %25, %26 : vector<8x256xf32>
    %c0_28 = arith.constant 0 : index
    %c0_29 = arith.constant 0 : index
    %28 = vector.load %arg9[%c0_28, %c0_29] : memref<10x256xf32, #tpu.memory_space<vmem>>, vector<1x256xf32>
    tpu.vector_store %arg9[%c0_28, %c0_29], %2 {strides = array<i32>} : memref<10x256xf32, #tpu.memory_space<vmem>>, vector<1x256xf32>,
    %c9_30 = arith.constant 9 : index
    %c0_31 = arith.constant 0 : index
    %29 = vector.load %arg9[%c9_30, %c0_31] : memref<10x256xf32, #tpu.memory_space<vmem>>, vector<1x256xf32>
    tpu.vector_store %arg9[%c9_30, %c0_31], %2 {strides = array<i32>} : memref<10x256xf32, #tpu.memory_space<vmem>>, vector<1x256xf32>,
    %c1_32 = arith.constant 1 : index
    %c0_33 = arith.constant 0 : index
    %30 = vector.load %arg9[%c1_32, %c0_33] : memref<10x256xf32, #tpu.memory_space<vmem>>, vector<8x256xf32>
    tpu.vector_store %arg9[%c1_32, %c0_33], %27 {strides = array<i32>} : memref<10x256xf32, #tpu.memory_space<vmem>>, vector<8x256xf32>,
    %c0_34 = arith.constant 0 : index
    %c0_35 = arith.constant 0 : index
    %31 = vector.load %arg9[%c0_34, %c0_35] : memref<10x256xf32, #tpu.memory_space<vmem>>, vector<8x256xf32>
    %c0_36 = arith.constant 0 : index
    %c0_37 = arith.constant 0 : index
    %c0_38 = arith.constant 0 : index
    %32 = vector.load %arg3[%c0_36, %c0_37, %c0_38] : memref<3x256x256xf32, #tpu.memory_space<vmem>>, vector<1x256x256xf32>
    %33 = vector.shape_cast %32 : vector<1x256x256xf32> to vector<256x256xf32>
    %cst_39 = arith.constant dense<0.000000e+00> : vector<8x256xf32>
    %34 = tpu.matmul %31, %33, %cst_39 {dimension_numbers = #tpu.dot_dimension_numbers<[1], [0], [0], [1], [0, 0, 1, 1], [], []>} : vector<8x256xf32>, vector<256x256xf32>, vector<8x256xf32> -> vector<8x256xf32>
    %c1_40 = arith.constant 1 : index
    %c0_41 = arith.constant 0 : index
    %35 = vector.load %arg9[%c1_40, %c0_41] : memref<10x256xf32, #tpu.memory_space<vmem>>, vector<8x256xf32>
    %c1_42 = arith.constant 1 : index
    %c0_43 = arith.constant 0 : index
    %c0_44 = arith.constant 0 : index
    %36 = vector.load %arg3[%c1_42, %c0_43, %c0_44] : memref<3x256x256xf32, #tpu.memory_space<vmem>>, vector<1x256x256xf32>
    %37 = vector.shape_cast %36 : vector<1x256x256xf32> to vector<256x256xf32>
    %cst_45 = arith.constant dense<0.000000e+00> : vector<8x256xf32>
    %38 = tpu.matmul %35, %37, %cst_45 {dimension_numbers = #tpu.dot_dimension_numbers<[1], [0], [0], [1], [0, 0, 1, 1], [], []>} : vector<8x256xf32>, vector<256x256xf32>, vector<8x256xf32> -> vector<8x256xf32>
    %39 = arith.addf %34, %38 : vector<8x256xf32>
    %c2_46 = arith.constant 2 : index
    %c0_47 = arith.constant 0 : index
    %40 = vector.load %arg9[%c2_46, %c0_47] : memref<10x256xf32, #tpu.memory_space<vmem>>, vector<8x256xf32>
    %c2_48 = arith.constant 2 : index
    %c0_49 = arith.constant 0 : index
    %c0_50 = arith.constant 0 : index
    %41 = vector.load %arg3[%c2_48, %c0_49, %c0_50] : memref<3x256x256xf32, #tpu.memory_space<vmem>>, vector<1x256x256xf32>
    %42 = vector.shape_cast %41 : vector<1x256x256xf32> to vector<256x256xf32>
    %cst_51 = arith.constant dense<0.000000e+00> : vector<8x256xf32>
    %43 = tpu.matmul %40, %42, %cst_51 {dimension_numbers = #tpu.dot_dimension_numbers<[1], [0], [0], [1], [0, 0, 1, 1], [], []>} : vector<8x256xf32>, vector<256x256xf32>, vector<8x256xf32> -> vector<8x256xf32>
    %44 = arith.addf %39, %43 : vector<8x256xf32>
    %c0_52 = arith.constant 0 : index
    %c0_53 = arith.constant 0 : index
    %45 = vector.load %arg6[%c0_52, %c0_53] : memref<1x256xf32, #tpu.memory_space<vmem>>, vector<1x256xf32>
    %46 = vector.broadcast %45 : vector<1x256xf32> to vector<8x256xf32>
    %47 = arith.mulf %44, %46 : vector<8x256xf32>
    %c0_54 = arith.constant 0 : index
    %c0_55 = arith.constant 0 : index
    %48 = vector.load %arg7[%c0_54, %c0_55] : memref<1x256xf32, #tpu.memory_space<vmem>>, vector<1x256xf32>
    %49 = vector.broadcast %48 : vector<1x256xf32> to vector<8x256xf32>
    %50 = arith.addf %47, %49 : vector<8x256xf32>
    %51 = arith.addf %1, %50 : vector<8x256xf32>
    %cst_56 = arith.constant 0.000000e+00 : f32
    %52 = vector.broadcast %cst_56 : f32 to vector<8x256xf32>
    %53 = arith.maximumf %51, %52 : vector<8x256xf32>
    %54 = vector.shape_cast %53 : vector<8x256xf32> to vector<1x8x256xf32>
    %c0_57 = arith.constant 0 : index
    %c0_58 = arith.constant 0 : index
    %c0_59 = arith.constant 0 : index
    %55 = vector.load %arg8[%c0_57, %c0_58, %c0_59] : memref<1x8x256xf32, #tpu.memory_space<vmem>>, vector<1x8x256xf32>
    tpu.vector_store %arg8[%c0_57, %c0_58, %c0_59], %54 {strides = array<i32>} : memref<1x8x256xf32, #tpu.memory_space<vmem>>, vector<1x8x256xf32>,
    return
  }
  func.func @transform_0(%arg0: i32) -> (i32, i32, i32) {
    %c0_i32 = arith.constant 0 : i32
    %c0_i32_0 = arith.constant 0 : i32
    %c0_i32_1 = arith.constant 0 : i32
    return %arg0, %c0_i32, %c0_i32_0 : i32, i32, i32
  }
  func.func @transform_1(%arg0: i32) -> (i32, i32, i32) {
    %c0_i32 = arith.constant 0 : i32
    %c0_i32_0 = arith.constant 0 : i32
    %c0_i32_1 = arith.constant 0 : i32
    %c0_i32_2 = arith.constant 0 : i32
    return %c0_i32, %c0_i32_0, %c0_i32_1 : i32, i32, i32
  }
  func.func @transform_2(%arg0: i32) -> (i32, i32, i32) {
    %c0_i32 = arith.constant 0 : i32
    %c0_i32_0 = arith.constant 0 : i32
    %c0_i32_1 = arith.constant 0 : i32
    %c0_i32_2 = arith.constant 0 : i32
    return %c0_i32, %c0_i32_0, %c0_i32_1 : i32, i32, i32
  }
  func.func @transform_3(%arg0: i32) -> (i32, i32) {
    %c0_i32 = arith.constant 0 : i32
    %c0_i32_0 = arith.constant 0 : i32
    %c0_i32_1 = arith.constant 0 : i32
    return %c0_i32, %c0_i32_0 : i32, i32
  }
  func.func @transform_4(%arg0: i32) -> (i32, i32) {
    %c0_i32 = arith.constant 0 : i32
    %c0_i32_0 = arith.constant 0 : i32
    %c0_i32_1 = arith.constant 0 : i32
    return %c0_i32, %c0_i32_0 : i32, i32
  }
  func.func @transform_5(%arg0: i32) -> (i32, i32) {
    %c0_i32 = arith.constant 0 : i32
    %c0_i32_0 = arith.constant 0 : i32
    %c0_i32_1 = arith.constant 0 : i32
    return %c0_i32, %c0_i32_0 : i32, i32
  }
  func.func @transform_6(%arg0: i32) -> (i32, i32) {
    %c0_i32 = arith.constant 0 : i32
    %c0_i32_0 = arith.constant 0 : i32
    %c0_i32_1 = arith.constant 0 : i32
    return %c0_i32, %c0_i32_0 : i32, i32
  }
  func.func @transform_7(%arg0: i32) -> (i32, i32, i32) {
    %c0_i32 = arith.constant 0 : i32
    %c0_i32_0 = arith.constant 0 : i32
    %c0_i32_1 = arith.constant 0 : i32
    return %arg0, %c0_i32, %c0_i32_0 : i32, i32, i32
  }
}

</mosaic_0001>

<bundles_post_ra>
// kernel: tpu_custom_call.1
= control target key start
LH: loop header
LB: loop body
LE: loop exit
PB: predicated region body
PF: predicated region fallthrough
CT: control target
= control target key end

     0   :  { %12 = vsyncpa [#allocation4], 0  ;;  %s2402_s0 = inlined_call_operand.hbm [shape: f32[2,8,256], index: 0, kind: input, shape index: {}]   ;;  %s2403_s1 = inlined_call_operand.hbm [shape: f32[3,256,256], index: 1, kind: input, shape index: {}]   ;;  %s2404_s2 = inlined_call_operand.hbm [shape: f32[3,256,256], index: 2, kind: input, shape index: {}]   ;;  %s2405_s3 = inlined_call_operand.vmem [shape: f32[1,256], index: 3, kind: input, shape index: {}]   ;;  %s2406_s4 = inlined_call_operand.vmem [shape: f32[1,256], index: 4, kind: input, shape index: {}]   ;;  %s2407_s5 = inlined_call_operand.vmem [shape: f32[1,256], index: 5, kind: input, shape index: {}]   ;;  %s2408_s6 = inlined_call_operand.vmem [shape: f32[1,256], index: 6, kind: input, shape index: {}]   ;;  %s2409_s7 = inlined_call_operand.hbm [shape: f32[2,8,256], index: 7, kind: output, shape index: {}]  }
   0x1   :  { %14 = vsyncpa [#allocation4 + $0x1], 0 }
   0x2   :  { %15 = vsyncpa [#allocation7], 0 }
   0x3   :  { %16 = vsyncpa [#allocation5], 0 }
   0x4   :  { %18 = vsyncpa [#allocation5 + $0x1], 0  ;;  %s2104_s24 = smov 0   ;;  %s2106_s25 = smov 0  }
   0x5   :  { %s2108_s26 = smov 0   ;;  %s2110_s27 = smov 0  }
   0x6 LB: > { %s2125_s28 = sadd.s32 4294967295, %s2055_s27   ;;  %s1415_s29 = sadd.s32 4294967294, %s2055_s27   ;;  %s2055_s27 = sphi %s2110_s27, %s2431_s27   ;;  %s2051_s26 = sphi %s2108_s26, %s2430_s26   ;;  %s2047_s25 = sphi %s2106_s25, %s2429_s25   ;;  %s2043_s24 = sphi %s2104_s24, %s2428_s24  }
   0x7   : > { %p44_p0 = scmp.ne.s32.totalorder %s2047_s25, %s2043_s24  ;;  %p2410_p1 = scmp.eq.s32.totalorder %s2125_s28, 0 }
   0x8   : > { %p200_p3 = scmp.eq.s32.totalorder %s1415_s29, 1  ;;  %p1416_p5 = scmp.ge.s32.totalorder %s2055_s27, 1 }
   0x9   : > { %p2134_p4 = por %p2410_p1, %p44_p0  ;;  %p207_p7 = scmp.lt.s32.totalorder %s2055_s27, 3 }
   0xa   : > { %p2139_p6 = por %p200_p3, %p44_p0  ;;  %s2057_s10 = smov [#allocation6]  }
   0xb   : > { %s2413_s30 = scalar_select %p2134_p4, 1, 0 }
   0xc   : > { %s2414_s8 = scalar_select %p2139_p6, 1, 0 }
   0xd   : > { %p2144_p8 = pnand %p1416_p5, %p207_p7  ;;  %s219_s11 = sshll.u32 %s2057_s10, 4  ;;  %s2148_s11 = int_to_ptr.vmem [resolvable:$true] %s219_s11 }
   0xe   : > { %s2058_s13 = smov [#allocation8]   ;;  %s1899_s17 = scalar_lea.hbm %s2403_s1, 24576 }
   0xf   : > { %p1839_p9 = pneg %p2144_p8  ;;  %s232_s14 = sshll.u32 %s2058_s13, 4  ;;  %s2159_s14 = int_to_ptr.vmem [resolvable:$true] %s232_s14 }
  0x10   : > { %p1900_p12 = scmp.ne.s32.totalorder %s2403_s1, %s1899_s17  ;;  %p1906_p5 = scmp.lt.u32.totalorder %s1899_s17, %s2403_s1 }
  0x11   : > { %p2155_p11 = pnand %p1839_p9, %p2410_p1 }
  0x13   : > { %p1901_p13 = pneg %p2155_p11 }
  0x15   : > { %p1902_p0 = pnand %p1901_p13, %p1900_p12 }
  0x17   : > { %p1903_p3 = pneg %p1902_p0 }
  0x19   : > { %p1908_p7 = pnand %p1906_p5, %p1903_p3 }
  0x1b   : > { %1911 = shalt.err (!%p1908_p7)
}
  0x1c   : > { %s1912_s22 = scalar_lea.vmem %s2148_s11, 24576  ;;  %p1920_p2 = scmp.lt.s32.totalorder %s2148_s11, %s2148_s11 }
  0x1d   : > { %p1913_p9 = scmp.ne.s32.totalorder %s2148_s11, %s1912_s22  ;;  %p1921_p12 = scmp.lt.s32.totalorder %s1912_s22, %s1912_s22 }
  0x1f   : > { %p1915_p10 = pnand %p1913_p9, %p1901_p13  ;;  %p1922_p0 = por %p1921_p12, %p1920_p2 }
  0x21   : > { %p1916_p1 = pneg %p1915_p10 }
  0x23   : > { %p1923_p6 = pnand %p1922_p0, %p1916_p1 }
  0x25   : > { %1926 = shalt.err (!%p1923_p6)
}
  0x26   : > { %s2059_s23 = smov 256   ;;  %s2060_s29 = smov 16  }
  0x27   : > { %1842 = dma.hbm_to_vmem [thread:$0]  (!%p2155_p11), %s2403_s1, 24576, %s2148_s11, [#allocation7], %s2059_s23, %s2059_s23, %s2060_s29  }
  0x28   : > { %s1927_s17 = scalar_lea.hbm %s2404_s2, 24576 }
  0x29   : > { %p1928_p2 = scmp.ne.s32.totalorder %s2404_s2, %s1927_s17  ;;  %p1934_p10 = scmp.lt.u32.totalorder %s1927_s17, %s2404_s2 }
  0x2b   : > { %p1930_p1 = pnand %p1928_p2, %p1901_p13 }
  0x2d   : > { %p1931_p6 = pneg %p1930_p1 }
  0x2f   : > { %p1936_p3 = pnand %p1934_p10, %p1931_p6 }
  0x31   : > { %1939 = shalt.err (!%p1936_p3)
}
  0x32   : > { %s1940_s11 = scalar_lea.vmem %s2159_s14, 24576  ;;  %p1948_p12 = scmp.lt.s32.totalorder %s2159_s14, %s2159_s14 }
  0x33   : > { %p1941_p5 = scmp.ne.s32.totalorder %s2159_s14, %s1940_s11  ;;  %p1949_p0 = scmp.lt.s32.totalorder %s1940_s11, %s1940_s11 }
  0x35   : > { %p1943_p7 = pnand %p1941_p5, %p1901_p13  ;;  %p1950_p2 = por %p1949_p0, %p1948_p12 }
  0x37   : > { %p1944_p9 = pneg %p1943_p7 }
  0x39   : > { %p1951_p1 = pnand %p1950_p2, %p1944_p9 }
  0x3b   : > { %1954 = shalt.err (!%p1951_p1)
}
  0x3c   : > { %1845 = dma.hbm_to_vmem [thread:$0]  (!%p2155_p11), %s2404_s2, 24576, %s2159_s14, [#allocation7], %s2059_s23, %s2059_s23, %s2060_s29  }
  0x3d   : > { %s2214_s13 = sadd.s32 1, %s2055_s27   ;;  %s31_s12 = sadd.s32 1, %s2051_s26 }
  0x3e   : > { %s28_s15 = ssub.s32 %s2055_s27, %s2214_s13  ;;  %p38_p13 = scmp.ne.s32.totalorder %s2051_s26, %s2047_s25 }
  0x3f   : > { %p29_p6 = scmp.eq.s32.totalorder %s28_s15, 0  ;;  %p39_p10 = scmp.eq.s32.totalorder %s2055_s27, 0 }
  0x40   : > { %p2417_p3 = scmp.eq.s32.totalorder %s2125_s28, 1  ;;  %p1856_p7 = scmp.lt.s32.totalorder %s2055_s27, 2 }
  0x41   : > { %s2230_s17 = scalar_select %p29_p6, %s2051_s26, %s31_s12  }
  0x42   : > { %p2224_p5 = por %p2417_p3, %p38_p13  ;;  %p40_p9 = por %p39_p10, %p38_p13 }
  0x43   : > { %s258_s18 = sand.u32 1, %s2051_s26   ;;  %s1433_s14 = sshll.u32 %s2055_s27, 8 }
  0x44   : > { %s2418_s16 = scalar_select %p2224_p5, 1, 0 }
  0x45   : > { %s1420_s19 = sshll.u32 %s258_s18, 4  ;;  %s2237_s20 = scalar_lea.hbm %s2402_s0, %s1433_s14 }
  0x46   : > { %s262_s21 = scalar_lea.vmem [#allocation3], %s1420_s19  ;;  %p2241_p11 = pnand %p1856_p7, %p40_p9 }
  0x47   : > { %s270_s11 = sshll.u32 %s262_s21, 4  ;;  %s259_s10 = scalar_lea.sflag [#allocation4], %s258_s18  ;;  %s2239_s11 = int_to_ptr.vmem [resolvable:$true] %s270_s11 }
  0x48   : > { %s1955_s12 = scalar_lea.hbm %s2237_s20, 256  ;;  %p1957_p0 = pneg %p2241_p11 }
  0x49   : > { %p1956_p12 = scmp.ne.s32.totalorder %s2237_s20, %s1955_s12  ;;  %s1960_s14 = scalar_lea.hbm %s2402_s0, 512 }
  0x4a   : > { %p1961_p13 = scmp.lt.u32.totalorder %s2237_s20, %s2402_s0  ;;  %p1962_p6 = scmp.lt.u32.totalorder %s1960_s14, %s1955_s12 }
  0x4b   : > { %p1958_p2 = pnand %p1957_p0, %p1956_p12  ;;  %p1964_p3 = scmp.lt.u32.totalorder %s1955_s12, %s2237_s20 }
  0x4c   : > { %p1963_p10 = por %p1962_p6, %p1961_p13 }
  0x4d   : > { %p1959_p1 = pneg %p1958_p2 }
  0x4e   : > { %p1965_p7 = por %p1964_p3, %p1963_p10 }
  0x50   : > { %p1966_p9 = pnand %p1965_p7, %p1959_p1 }
  0x52   : > { %1969 = shalt.err (!%p1966_p9)
}
  0x53   : > { %s1970_s18 = scalar_lea.vmem %s2239_s11, 256  ;;  %s2061_s21 = smov [#allocation3]  }
  0x54   : > { %p1971_p12 = scmp.ne.s32.totalorder %s2239_s11, %s1970_s18  ;;  %s1975_s15 = sshll.u32 %s2061_s21, 4  ;;  %s1976_s15 = int_to_ptr.vmem [resolvable:$false] %s1975_s15 }
  0x55   : > { %s1977_s19 = scalar_lea.vmem %s1976_s15, 512  ;;  %p1978_p4 = scmp.lt.s32.totalorder %s2239_s11, %s1976_s15 }
  0x56   : > { %p1973_p2 = pnand %p1971_p12, %p1957_p0  ;;  %p1979_p13 = scmp.lt.s32.totalorder %s1977_s19, %s1970_s18 }
  0x58   : > { %p1974_p5 = pneg %p1973_p2  ;;  %p1980_p6 = por %p1979_p13, %p1978_p4 }
  0x5a   : > { %p1981_p10 = pnand %p1980_p6, %p1974_p5 }
  0x5c   : > { %1984 = shalt.err (!%p1981_p10)
}
  0x5d   : > { %1849 = dma.hbm_to_vmem [thread:$0]  (!%p2241_p11), %s2237_s20, 256, %s2239_s11, %s259_s10  }
  0x5e   : > { %279 = sbr.rel (%p2144_p8) target bundleno = 896 (0x380), region = 48  ;;  %s2273_s12 = sand.u32 (!%p2144_p8), 1, %s2047_s25  }
  0x5f   : > { %s1424_s14 = sshll.u32 (!%p2144_p8), %s2273_s12, 4  ;;  %s282_s23 = scalar_lea.sflag (!%p2144_p8), [#allocation4], %s2273_s12 }
  0x60   : > { %s2279_s29 = scalar_lea.vmem (!%p2144_p8), [#allocation3], %s1424_s14  ;;  %p2420_p4 = scmp.ne.s32.totalorder (!%p2144_p8), %s2413_s30, 0 }
  0x65   : > { %2030 = dma.done.wait (%p2420_p4), %s282_s23, 256  }
  0x66   : > { %2032 = vsyncadd (%p2420_p4), %s282_s23, 4294967040  ;;  %p2421_p5 = scmp.eq.s32.totalorder %s2125_s28, 0 }
  0x68   : > { %2034 = dma.done.wait (%p2421_p5), [#allocation7], 49152   ;;  %p2422_p8 = pmov %p2421_p5 }
  0x69   : > { %v326_v0 = vlaneseq  ;;  %v2062_v2 = vmov 0.0   ;;  %v417_v3 = vld [vmem:[#allocation6 + $0x208] sm:$0xff]  ;;  %v419_v4 = vld [vmem:[#allocation6 + $0x218] sm:$0xff]  ;;  %v416_v5 = vld [vmem:[#allocation6 + $0x200] sm:$0xff]  ;;  %vm484_vm1 = vcmask 1046528   ;;  %vm708_vm2 = vcmask 1045504  }
  0x6a   : > { %2036 = vsyncadd (%p2422_p8), [#allocation7], 4294918144  ;;  %v1435_v6 = vpack.c.bf16 %v419_v4, %v417_v3  ;;  %v418_v7 = vld [vmem:[#allocation6 + $0x210] sm:$0xff]  ;;  %v421_v8 = vld [vmem:[#allocation6 + $0x228] sm:$0xff]  ;;  %s1434_s15 = sshll.u32 %s2125_s28, 8  ;;  %s323_s19 = scalar_lea.vmem [#allocation9], %s1424_s14 }
  0x6b   : > { %vm2290_vm0 = vcmp.lt.s32.totalorder %v326_v0, 256  ;;  %v423_v9 = vld [vmem:[#allocation6 + $0x238] sm:$0xff]  ;;  %v1437_v10 = vpack.c.bf16 %v418_v7, %v416_v5  ;;  %v420_v12 = vld [vmem:[#allocation6 + $0x220] sm:$0xff]  ;;  %v422_v13 = vld [vmem:[#allocation6 + $0x230] sm:$0xff]  ;;  %s1326_s23 = sshll.u32 %s323_s19, 4  ;;  %s2358_s20 = scalar_lea.hbm %s2409_s7, %s1434_s15  ;;  %s2360_s23 = int_to_ptr.vmem [resolvable:$true] %s1326_s23 }
  0x6c   : > { %330 = vst.msk [vmem:[#allocation2] ss:$8 sm:$0x3] %vm2290_vm0, %v2062_v2  ;;  %333 = vst.msk [vmem:[#allocation2 + $0x11] ss:$8 sm:$0x3] %vm2290_vm0, %v2062_v2  ;;  %v1439_v11 = vpack.c.bf16 %v423_v9, %v421_v8  ;;  %1436 = vmatprep.subr.bf16.mxu0 %v1435_v6  ;;  %v1441_v16 = vpack.c.bf16 %v422_v13, %v420_v12 }
  0x6d   : > { %v425_v14 = vld [vmem:[#allocation6 + $0x248] sm:$0xff]  ;;  %v427_v15 = vld [vmem:[#allocation6 + $0x258] sm:$0xff]  ;;  %1438 = vmatpush1.bf16.msra.mxu0 %v1437_v10  ;;  %v424_v18 = vld [vmem:[#allocation6 + $0x240] sm:$0xff]  ;;  %s1312_s28 = scalar_lea.sflag [#allocation5], %s2273_s12  ;;  %s1985_s11 = scalar_lea.vmem %s2360_s23, 256 }
  0x6e   : > { %1440 = vmatprep.subr.bf16.mxu0 %v1439_v11  ;;  %v1443_v17 = vpack.c.bf16 %v427_v15, %v425_v14  ;;  %v426_v19 = vld [vmem:[#allocation6 + $0x250] sm:$0xff]  ;;  %v429_v20 = vld [vmem:[#allocation6 + $0x268] sm:$0xff]  ;;  %v431_v21 = vld [vmem:[#allocation6 + $0x278] sm:$0xff]  ;;  %p1986_p11 = scmp.ne.s32.totalorder %s2360_s23, %s1985_s11  ;;  %p2425_p0 = scmp.ne.s32.totalorder %s2418_s16, 0 }
  0x6f   : > { %v1445_v22 = vpack.c.bf16 %v426_v19, %v424_v18  ;;  %v1447_v23 = vpack.c.bf16 %v431_v21, %v429_v20  ;;  %v428_v24 = vld [vmem:[#allocation6 + $0x260] sm:$0xff]  ;;  %v430_v25 = vld [vmem:[#allocation6 + $0x270] sm:$0xff]  ;;  %v433_v26 = vld [vmem:[#allocation6 + $0x288] sm:$0xff]  ;;  %s2063_s14 = smov [#allocation9]  }
  0x70   : > { %v435_v27 = vld [vmem:[#allocation6 + $0x298] sm:$0xff]  ;;  %v1449_v28 = vpack.c.bf16 %v430_v25, %v428_v24  ;;  %v432_v30 = vld [vmem:[#allocation6 + $0x280] sm:$0xff]  ;;  %v434_v31 = vld [vmem:[#allocation6 + $0x290] sm:$0xff]  ;;  %p1987_p1 = pnand %p1986_p11, %p2425_p0 }
  0x71   : > { %1442 = vmatpush1.bf16.msra.mxu0 %v1441_v16  ;;  %v1451_v29 = vpack.c.bf16 %v435_v27, %v433_v26  ;;  %v437_v32 = vld [vmem:[#allocation6 + $0x2a8] sm:$0xff]  ;;  %v439_v33 = vld [vmem:[#allocation6 + $0x2b8] sm:$0xff]  ;;  %v1453_v34 = vpack.c.bf16 %v434_v31, %v432_v30  ;;  %v436_v36 = vld [vmem:[#allocation6 + $0x2a0] sm:$0xff] }
  0x72   : > { %1444 = vmatprep.subr.bf16.mxu0 %v1443_v17  ;;  %v1455_v35 = vpack.c.bf16 %v439_v33, %v437_v32  ;;  %v438_v37 = vld [vmem:[#allocation6 + $0x2b0] sm:$0xff]  ;;  %v441_v38 = vld [vmem:[#allocation6 + $0x2c8] sm:$0xff]  ;;  %v443_v39 = vld [vmem:[#allocation6 + $0x2d8] sm:$0xff]  ;;  %p1988_p3 = pneg %p1987_p1 }
  0x73   : > { %v1457_v40 = vpack.c.bf16 %v438_v37, %v436_v36  ;;  %v1459_v41 = vpack.c.bf16 %v443_v39, %v441_v38  ;;  %v440_v42 = vld [vmem:[#allocation6 + $0x2c0] sm:$0xff]  ;;  %v442_v43 = vld [vmem:[#allocation6 + $0x2d0] sm:$0xff]  ;;  %v325_v44 = vld [vmem:[%s2279_s29 + $0x8] sm:$0xff] }
  0x74   : > { %v445_v45 = vld [vmem:[#allocation6 + $0x2e8] sm:$0xff]  ;;  %v447_v46 = vld [vmem:[#allocation6 + $0x2f8] sm:$0xff]  ;;  %v338_v47 = vrot.slane %v325_v44, 7  ;;  %v324_v48 = vld [vmem:[%s2279_s29] sm:$0xff]  ;;  %v1461_v50 = vpack.c.bf16 %v442_v43, %v440_v42 }
  0x75   : > { %1446 = vmatpush1.bf16.msra.mxu0 %v1445_v22  ;;  %v337_v49 = vrot.slane %v324_v48, 7  ;;  %v1463_v51 = vpack.c.bf16 %v447_v46, %v445_v45  ;;  %v444_v52 = vld [vmem:[#allocation6 + $0x2e0] sm:$0xff]  ;;  %v446_v53 = vld [vmem:[#allocation6 + $0x2f0] sm:$0xff]  ;;  %v449_v54 = vld [vmem:[#allocation6 + $0x308] sm:$0xff] }
  0x76   : > { %1448 = vmatprep.subr.bf16.mxu0 %v1447_v23  ;;  %342 = vst [vmem:[#allocation2 + $0x8] sm:$0xfe] %v338_v47  ;;  %344 = vst [vmem:[#allocation2 + $0x18] sm:$0x1] %v338_v47  ;;  %v451_v55 = vld [vmem:[#allocation6 + $0x318] sm:$0xff]  ;;  %v1465_v56 = vpack.c.bf16 %v446_v53, %v444_v52  ;;  %v448_v58 = vld [vmem:[#allocation6 + $0x300] sm:$0xff] }
  0x77   : > { %341 = vst [vmem:[#allocation2] sm:$0xfe] %v337_v49  ;;  %343 = vst [vmem:[#allocation2 + $0x10] sm:$0x1] %v337_v49  ;;  %v1467_v57 = vpack.c.bf16 %v451_v55, %v449_v54  ;;  %v450_v59 = vld [vmem:[#allocation6 + $0x310] sm:$0xff]  ;;  %v453_v60 = vld [vmem:[#allocation6 + $0x328] sm:$0xff] }
  0x78   : > { %v455_v61 = vld [vmem:[#allocation6 + $0x338] sm:$0xff]  ;;  %v1469_v3 = vpack.c.bf16 %v450_v59, %v448_v58  ;;  %v452_v7 = vld [vmem:[#allocation6 + $0x320] sm:$0xff]  ;;  %v454_v8 = vld [vmem:[#allocation6 + $0x330] sm:$0xff] }
  0x79   : > { %1450 = vmatpush1.bf16.msra.mxu0 %v1449_v28  ;;  %v1471_v6 = vpack.c.bf16 %v455_v61, %v453_v60  ;;  %v457_v9 = vld [vmem:[#allocation6 + $0x348] sm:$0xff]  ;;  %v459_v10 = vld [vmem:[#allocation6 + $0x358] sm:$0xff]  ;;  %v1473_v12 = vpack.c.bf16 %v454_v8, %v452_v7  ;;  %v456_v14 = vld [vmem:[#allocation6 + $0x340] sm:$0xff] }
  0x7a   : > { %1452 = vmatprep.subr.bf16.mxu0 %v1451_v29  ;;  %v1475_v13 = vpack.c.bf16 %v459_v10, %v457_v9  ;;  %v458_v15 = vld [vmem:[#allocation6 + $0x350] sm:$0xff]  ;;  %v461_v16 = vld [vmem:[#allocation6 + $0x368] sm:$0xff]  ;;  %v463_v17 = vld [vmem:[#allocation6 + $0x378] sm:$0xff] }
  0x7b   : > { %v1477_v18 = vpack.c.bf16 %v458_v15, %v456_v14  ;;  %v1479_v19 = vpack.c.bf16 %v463_v17, %v461_v16  ;;  %v460_v20 = vld [vmem:[#allocation6 + $0x360] sm:$0xff]  ;;  %v462_v21 = vld [vmem:[#allocation6 + $0x370] sm:$0xff]  ;;  %v465_v22 = vld [vmem:[#allocation6 + $0x388] sm:$0xff] }
  0x7c   : > { %v467_v23 = vld [vmem:[#allocation6 + $0x398] sm:$0xff]  ;;  %v1481_v24 = vpack.c.bf16 %v462_v21, %v460_v20  ;;  %v464_v26 = vld [vmem:[#allocation6 + $0x380] sm:$0xff]  ;;  %v466_v27 = vld [vmem:[#allocation6 + $0x390] sm:$0xff] }
  0x7d   : > { %1454 = vmatpush1.bf16.msra.mxu0 %v1453_v34  ;;  %v412_v62 = vld [vmem:[#allocation2 + $0x8] sm:$0xfe]  ;;  %v414_v63 = vld [vmem:[#allocation2 + $0x18] sm:$0x1]  ;;  %v1483_v25 = vpack.c.bf16 %v467_v23, %v465_v22  ;;  %v1485_v32 = vpack.c.bf16 %v466_v27, %v464_v26  ;;  %v468_v34 = vld [vmem:[#allocation6 + $0x3a0] sm:$0xff] }
  0x7e   : > { %1456 = vmatprep.subr.bf16.mxu0 %v1455_v35  ;;  %v488_v4 = vrot.slane %v412_v62, 1  ;;  %v489_v5 = vrot.slane %v414_v63, 1  ;;  %v469_v28 = vld [vmem:[#allocation6 + $0x3a8] sm:$0xff]  ;;  %v471_v29 = vld [vmem:[#allocation6 + $0x3b8] sm:$0xff]  ;;  %v2303_v31 = vld [vmem:[#allocation2] sm:$0xff] }
  0x7f   : > { %v346_v30 = vld [vmem:[#allocation2 + $0x8] sm:$0xff]  ;;  %v1487_v33 = vpack.c.bf16 %v471_v29, %v469_v28  ;;  %v470_v35 = vld [vmem:[#allocation6 + $0x3b0] sm:$0xff]  ;;  %v475_v37 = vld [vmem:[#allocation6 + $0x3d8] sm:$0xff] }
  0x80   : > { %v490_v11 = vsel %vm484_vm1, %v488_v4, %v489_v5  ;;  %820 = vst.msk [vmem:[#allocation2] ss:$8 sm:$0x3] %vm2290_vm0, %v2062_v2  ;;  %v473_v36 = vld [vmem:[#allocation6 + $0x3c8] sm:$0xff]  ;;  %v1489_v38 = vpack.c.bf16 %v470_v35, %v468_v34  ;;  %v479_v43 = vld [vmem:[#allocation6 + $0x3f8] sm:$0xff]  ;;  %v476_v45 = vld [vmem:[#allocation6 + $0x3e0] sm:$0xff] }
  0x81   : > { %1458 = vmatpush1.bf16.msra.mxu0 %v1457_v40  ;;  %557 = vmatprep.mubr.f32.mxu0 %v490_v11  ;;  %v1491_v39 = vpack.c.bf16 %v475_v37, %v473_v36  ;;  %v472_v40 = vld [vmem:[#allocation6 + $0x3c0] sm:$0xff]  ;;  %v477_v42 = vld [vmem:[#allocation6 + $0x3e8] sm:$0xff]  ;;  %v478_v47 = vld [vmem:[#allocation6 + $0x3f0] sm:$0xff] }
  0x82   : > { %1460 = vmatprep.subr.bf16.mxu0 %v1459_v41  ;;  %v474_v41 = vld [vmem:[#allocation6 + $0x3d0] sm:$0xff]  ;;  %v1495_v46 = vpack.c.bf16 %v479_v43, %v477_v42  ;;  %v411_v48 = vld [vmem:[#allocation2] sm:$0xfe]  ;;  %v1497_v52 = vpack.c.bf16 %v478_v47, %v476_v45  ;;  %v352_v58 = vld [vmem:[#allocation6 + $0x28] sm:$0xff] }
  0x83   : > { %v1493_v44 = vpack.c.bf16 %v474_v41, %v472_v40  ;;  %v413_v49 = vld [vmem:[#allocation2 + $0x10] sm:$0x1]  ;;  %v485_v53 = vrot.slane %v411_v48, 1  ;;  %v354_v59 = vld [vmem:[#allocation6 + $0x38] sm:$0xff]  ;;  %v351_v63 = vld [vmem:[#allocation6 + $0x20] sm:$0xff] }
  0x84   : > { %v486_v54 = vrot.slane %v413_v49, 1  ;;  %v1503_v62 = vpack.c.bf16 %v354_v59, %v352_v58  ;;  %v356_v4 = vld [vmem:[#allocation6 + $0x48] sm:$0xff]  ;;  %v358_v5 = vld [vmem:[#allocation6 + $0x58] sm:$0xff]  ;;  %v357_v7 = vld [vmem:[#allocation6 + $0x50] sm:$0xff] }
  0x85   : > { %1462 = vmatpush1.bf16.msra.mxu0 %v1461_v50  ;;  %v348_v50 = vld [vmem:[#allocation6 + $0x8] sm:$0xff]  ;;  %v362_v10 = vld [vmem:[#allocation6 + $0x78] sm:$0xff]  ;;  %v1507_v14 = vpack.c.bf16 %v358_v5, %v356_v4  ;;  %v905_v16 = vld [vmem:[#allocation8 + $0x200] sm:$0xff] }
  0x86   : > { %1464 = vmatprep.subr.bf16.mxu0 %v1463_v51  ;;  %v350_v51 = vld [vmem:[#allocation6 + $0x18] sm:$0xff]  ;;  %v487_v60 = vsel %vm484_vm1, %v485_v53, %v486_v54  ;;  %v360_v9 = vld [vmem:[#allocation6 + $0x68] sm:$0xff]  ;;  %v907_v17 = vld [vmem:[#allocation8 + $0x210] sm:$0xff] }
  0x87   : > { %v1499_v55 = vpack.c.bf16 %v350_v51, %v348_v50  ;;  %v2309_v11 = vld [vmem:[#allocation2 + $0x18] sm:$0x3]  ;;  %v910_v20 = vld [vmem:[#allocation8 + $0x228] sm:$0xff]  ;;  %v909_v22 = vld [vmem:[#allocation8 + $0x220] sm:$0xff]  ;;  %v1511_v28 = vpack.c.bf16 %v362_v10, %v360_v9 }
  0x88   : > { %v908_v15 = vld [vmem:[#allocation8 + $0x218] sm:$0xff]  ;;  %v359_v29 = vld [vmem:[#allocation6 + $0x60] sm:$0xff]  ;;  %v361_v1 = vld [vmem:[#allocation6 + $0x70] sm:$0xff] }
  0x89   : > { %1466 = vmatpush1.bf16.msra.mxu0 %v1465_v56  ;;  %v347_v56 = vld [vmem:[#allocation6] sm:$0xff]  ;;  %v912_v21 = vld [vmem:[#allocation8 + $0x238] sm:$0xff]  ;;  %v915_v35 = vld [vmem:[#allocation8 + $0x250] sm:$0xff] }
  0x8a   : > { %1468 = vmatprep.subr.bf16.mxu0 %v1467_v57  ;;  %v349_v57 = vld [vmem:[#allocation6 + $0x10] sm:$0xff]  ;;  %v1631_v23 = vpack.c.bf16 %v912_v21, %v910_v20  ;;  %v916_v26 = vld [vmem:[#allocation8 + $0x258] sm:$0xff]  ;;  %v913_v34 = vld [vmem:[#allocation8 + $0x240] sm:$0xff] }
  0x8b   : > { %v1501_v61 = vpack.c.bf16 %v349_v57, %v347_v56  ;;  %v918_v36 = vld [vmem:[#allocation8 + $0x268] sm:$0xff]  ;;  %v920_v37 = vld [vmem:[#allocation8 + $0x278] sm:$0xff]  ;;  %v363_v40 = vld [vmem:[#allocation6 + $0x80] sm:$0xff]  ;;  %v1637_v43 = vpack.c.bf16 %v915_v35, %v913_v34 }
  0x8c   : > { %v365_v41 = vld [vmem:[#allocation6 + $0x90] sm:$0xff]  ;;  %v368_v42 = vld [vmem:[#allocation6 + $0xa8] sm:$0xff]  ;;  %v1639_v45 = vpack.c.bf16 %v920_v37, %v918_v36  ;;  %v924_v49 = vld [vmem:[#allocation8 + $0x298] sm:$0xff] }
  0x8d   : > { %1470 = vmatpush1.bf16.msra.mxu0 %v1469_v3  ;;  %v353_v3 = vld [vmem:[#allocation6 + $0x30] sm:$0xff]  ;;  %v922_v48 = vld [vmem:[#allocation8 + $0x288] sm:$0xff]  ;;  %v1517_v50 = vpack.c.bf16 %v365_v41, %v363_v40  ;;  %v374_v56 = vld [vmem:[#allocation6 + $0xd8] sm:$0xff] }
  0x8e   : > { %1472 = vmatprep.subr.bf16.mxu0 %v1471_v6  ;;  %v355_v6 = vld [vmem:[#allocation6 + $0x40] sm:$0xff]  ;;  %v1505_v8 = vpack.c.bf16 %v353_v3, %v351_v63  ;;  %v919_v47 = vld [vmem:[#allocation8 + $0x270] sm:$0xff]  ;;  %v372_v54 = vld [vmem:[#allocation6 + $0xc8] sm:$0xff]  ;;  %v1643_v57 = vpack.c.bf16 %v924_v49, %v922_v48 }
  0x8f   : > { %v1509_v27 = vpack.c.bf16 %v357_v7, %v355_v6  ;;  %v369_v53 = vld [vmem:[#allocation6 + $0xb0] sm:$0xff]  ;;  %v921_v58 = vld [vmem:[#allocation8 + $0x280] sm:$0xff]  ;;  %v1523_v63 = vpack.c.bf16 %v374_v56, %v372_v54  ;;  %v376_v5 = vld [vmem:[#allocation6 + $0xe8] sm:$0xff] }
  0x90   : > { %v923_v59 = vld [vmem:[#allocation8 + $0x290] sm:$0xff]  ;;  %v371_v3 = vld [vmem:[#allocation6 + $0xc0] sm:$0xff]  ;;  %v378_v7 = vld [vmem:[#allocation6 + $0xf8] sm:$0xff] }
  0x91   : > { %1474 = vmatpush1.bf16.msra.mxu0 %v1473_v12  ;;  %v2311_v12 = vld [vmem:[#allocation2 + $0x10] sm:$0x3]  ;;  %v1645_v6 = vpack.c.bf16 %v923_v59, %v921_v58  ;;  %v925_v9 = vld [vmem:[#allocation8 + $0x2a0] sm:$0xff]  ;;  %v382_v21 = vld [vmem:[#allocation6 + $0x118] sm:$0xff] }
  0x92   : > { %1476 = vmatprep.subr.bf16.mxu0 %v1475_v13  ;;  %v906_v13 = vld [vmem:[#allocation8 + $0x208] sm:$0xff]  ;;  %822 = vst.msk [vmem:[#allocation2 + $0x11] ss:$8 sm:$0x3] %vm2290_vm0, %v2062_v2  ;;  %v373_v4 = vld [vmem:[#allocation6 + $0xd0] sm:$0xff]  ;;  %v933_v34 = vld [vmem:[#allocation8 + $0x2e0] sm:$0xff] }
  0x93   : > { %v364_v2 = vld [vmem:[#allocation6 + $0x88] sm:$0xff]  ;;  %v927_v10 = vld [vmem:[#allocation8 + $0x2b0] sm:$0xff]  ;;  %v940_v37 = vld [vmem:[#allocation8 + $0x318] sm:$0xff] }
  0x94   : > { %v1649_v20 = vpack.c.bf16 %v927_v10, %v925_v9  ;;  %v935_v35 = vld [vmem:[#allocation8 + $0x2f0] sm:$0xff]  ;;  %v938_v36 = vld [vmem:[#allocation8 + $0x308] sm:$0xff]  ;;  %v383_v40 = vld [vmem:[#allocation6 + $0x120] sm:$0xff] }
  0x95   : > { %1478 = vmatpush1.bf16.msra.mxu0 %v1477_v18  ;;  %v1627_v18 = vpack.c.bf16 %v908_v15, %v906_v13  ;;  %v930_v13 = vld [vmem:[#allocation8 + $0x2c8] sm:$0xff]  ;;  %v1525_v15 = vpack.c.bf16 %v373_v4, %v371_v3  ;;  %v385_v41 = vld [vmem:[#allocation6 + $0x130] sm:$0xff]  ;;  %v944_v49 = vld [vmem:[#allocation8 + $0x338] sm:$0xff] }
  0x96   : > { %1480 = vmatprep.subr.bf16.mxu0 %v1479_v19  ;;  %v1629_v19 = vpack.c.bf16 %v907_v17, %v905_v16  ;;  %v1527_v16 = vpack.c.bf16 %v378_v7, %v376_v5  ;;  %v375_v17 = vld [vmem:[#allocation6 + $0xe0] sm:$0xff]  ;;  %v942_v48 = vld [vmem:[#allocation8 + $0x328] sm:$0xff]  ;;  %v394_v56 = vld [vmem:[#allocation6 + $0x178] sm:$0xff] }
  0x97   : > { %1628 = vmatprep.subr.bf16.mxu1 %v1627_v18  ;;  %v377_v18 = vld [vmem:[#allocation6 + $0xf0] sm:$0xff]  ;;  %v392_v54 = vld [vmem:[#allocation6 + $0x168] sm:$0xff]  ;;  %v941_v58 = vld [vmem:[#allocation8 + $0x320] sm:$0xff] }
  0x98   : > { %1630 = vmatpush1.bf16.msra.mxu1 %v1629_v19  ;;  %v380_v19 = vld [vmem:[#allocation6 + $0x108] sm:$0xff]  ;;  %v943_v59 = vld [vmem:[#allocation8 + $0x330] sm:$0xff]  ;;  %v391_v3 = vld [vmem:[#allocation6 + $0x160] sm:$0xff] }
  0x99   : > { %1482 = vmatpush1.bf16.msra.mxu0 %v1481_v24  ;;  %v911_v24 = vld [vmem:[#allocation8 + $0x230] sm:$0xff]  ;;  %1632 = vmatprep.subr.bf16.mxu1 %v1631_v23  ;;  %v929_v23 = vld [vmem:[#allocation8 + $0x2c0] sm:$0xff]  ;;  %v396_v5 = vld [vmem:[#allocation6 + $0x188] sm:$0xff] }
  0x9a   : > { %1484 = vmatprep.subr.bf16.mxu0 %v1483_v25  ;;  %v914_v25 = vld [vmem:[#allocation8 + $0x248] sm:$0xff]  ;;  %v393_v4 = vld [vmem:[#allocation6 + $0x170] sm:$0xff]  ;;  %v398_v7 = vld [vmem:[#allocation6 + $0x198] sm:$0xff] }
  0x9b   : > { %v945_v9 = vld [vmem:[#allocation8 + $0x340] sm:$0xff]  ;;  %v947_v10 = vld [vmem:[#allocation8 + $0x350] sm:$0xff] }
  0x9d   : > { %1486 = vmatpush1.bf16.msra.mxu0 %v1485_v32  ;;  %v366_v32 = vld [vmem:[#allocation6 + $0x98] sm:$0xff] }
  0x9e   : > { %1488 = vmatprep.subr.bf16.mxu0 %v1487_v33  ;;  %v1635_v33 = vpack.c.bf16 %v916_v26, %v914_v25  ;;  %v934_v25 = vld [vmem:[#allocation8 + $0x2e8] sm:$0xff]  ;;  %v936_v26 = vld [vmem:[#allocation8 + $0x2f8] sm:$0xff] }
  0xa1   : > { %1490 = vmatpush1.bf16.msra.mxu0 %v1489_v38  ;;  %v1513_v38 = vpack.c.bf16 %v361_v1, %v359_v29  ;;  %v379_v29 = vld [vmem:[#allocation6 + $0x100] sm:$0xff]  ;;  %v381_v1 = vld [vmem:[#allocation6 + $0x110] sm:$0xff] }
  0xa2   : > { %1492 = vmatprep.subr.bf16.mxu0 %v1491_v39  ;;  %v1515_v39 = vpack.c.bf16 %v366_v32, %v364_v2  ;;  %v384_v2 = vld [vmem:[#allocation6 + $0x128] sm:$0xff]  ;;  %v386_v32 = vld [vmem:[#allocation6 + $0x138] sm:$0xff] }
  0xa5   : > { %1494 = vmatpush1.bf16.msra.mxu0 %v1493_v44  ;;  %v370_v44 = vld [vmem:[#allocation6 + $0xb8] sm:$0xff] }
  0xa6   : > { %1496 = vmatprep.subr.bf16.mxu0 %v1495_v46  ;;  %v917_v46 = vld [vmem:[#allocation8 + $0x260] sm:$0xff]  ;;  %v1519_v51 = vpack.c.bf16 %v370_v44, %v368_v42  ;;  %v388_v42 = vld [vmem:[#allocation6 + $0x148] sm:$0xff]  ;;  %v390_v44 = vld [vmem:[#allocation6 + $0x158] sm:$0xff] }
  0xa9   : > { %1498 = vmatpush1.bf16.msra.mxu0 %v1497_v52  ;;  %v367_v52 = vld [vmem:[#allocation6 + $0xa0] sm:$0xff] }
  0xaa   : > { %1500 = vmatprep.subr.bf16.mxu0 %v1499_v55  ;;  %v1641_v55 = vpack.c.bf16 %v919_v47, %v917_v46  ;;  %v937_v46 = vld [vmem:[#allocation8 + $0x300] sm:$0xff]  ;;  %v939_v47 = vld [vmem:[#allocation8 + $0x310] sm:$0xff] }
  0xac   : > { %558 = vmatmul.mubr.f32.vlgmr.msra.gmra.mrb[0].mxu0 %v487_v60  ;;  %v926_v60 = vld [vmem:[#allocation8 + $0x2a8] sm:$0xff] }
  0xad   : > { %1502 = vmatpush1.bf16.msra.mxu0 %v1501_v61  ;;  %628 = vmatprep.mubr.f32.mxu0 %v346_v30  ;;  %v1633_v30 = vpack.c.bf16 %v911_v24, %v909_v22  ;;  %v928_v61 = vld [vmem:[#allocation8 + $0x2b8] sm:$0xff]  ;;  %v931_v24 = vld [vmem:[#allocation8 + $0x2d0] sm:$0xff] }
  0xae   : > { %1504 = vmatprep.subr.bf16.mxu0 %v1503_v62  ;;  %v1521_v62 = vpack.c.bf16 %v369_v53, %v367_v52  ;;  %v387_v52 = vld [vmem:[#allocation6 + $0x140] sm:$0xff]  ;;  %v389_v53 = vld [vmem:[#allocation6 + $0x150] sm:$0xff] }
  0xaf   : > { %1634 = vmatpush1.bf16.msra.mxu1 %v1633_v30  ;;  %v1653_v30 = vpack.c.bf16 %v931_v24, %v929_v23  ;;  %v401_v23 = vld [vmem:[#allocation6 + $0x1b0] sm:$0xff]  ;;  %v404_v24 = vld [vmem:[#allocation6 + $0x1c8] sm:$0xff] }
  0xb0   : > { %1636 = vmatprep.subr.bf16.mxu1 %v1635_v33  ;;  %v1655_v33 = vpack.c.bf16 %v936_v26, %v934_v25  ;;  %v406_v25 = vld [vmem:[#allocation6 + $0x1d8] sm:$0xff] }
  0xb1   : > { %1506 = vmatpush1.bf16.msra.mxu0 %v1505_v8  ;;  %v1647_v8 = vpack.c.bf16 %v928_v61, %v926_v60  ;;  %v946_v60 = vld [vmem:[#allocation8 + $0x348] sm:$0xff]  ;;  %v948_v61 = vld [vmem:[#allocation8 + $0x358] sm:$0xff] }
  0xb2   : > { %1508 = vmatprep.subr.bf16.mxu0 %v1507_v14  ;;  %v932_v14 = vld [vmem:[#allocation8 + $0x2d8] sm:$0xff] }
  0xb3   : > { %1638 = vmatpush1.bf16.msra.mxu1 %v1637_v43  ;;  %v1651_v22 = vpack.c.bf16 %v932_v14, %v930_v13  ;;  %v1657_v43 = vpack.c.bf16 %v935_v35, %v933_v34  ;;  %v1545_v13 = vpack.c.bf16 %v393_v4, %v391_v3  ;;  %v1547_v14 = vpack.c.bf16 %v398_v7, %v396_v5  ;;  %v409_v34 = vld [vmem:[#allocation6 + $0x1f0] sm:$0xff]  ;;  %v641_v35 = vld [vmem:[#allocation6 + $0x408] sm:$0xff]  ;;  %v656_v4 = vld [vmem:[#allocation6 + $0x480] sm:$0xff] }
  0xb4   : > { %1640 = vmatprep.subr.bf16.mxu1 %v1639_v45  ;;  %v1659_v45 = vpack.c.bf16 %v940_v37, %v938_v36  ;;  %v643_v36 = vld [vmem:[#allocation6 + $0x418] sm:$0xff]  ;;  %v636_v37 = vld [vmem:[#allocation2 + $0x8] sm:$0xfc]  ;;  %v658_v5 = vld [vmem:[#allocation6 + $0x490] sm:$0xff] }
  0xb5   : > { %1510 = vmatpush1.bf16.msra.mxu0 %v1509_v27  ;;  %v1529_v27 = vpack.c.bf16 %v377_v18, %v375_v17  ;;  %v1669_v17 = vpack.c.bf16 %v947_v10, %v945_v9  ;;  %v400_v18 = vld [vmem:[#allocation6 + $0x1a8] sm:$0xff]  ;;  %v663_v7 = vld [vmem:[#allocation6 + $0x4b8] sm:$0xff]  ;;  %v660_v10 = vld [vmem:[#allocation6 + $0x4a0] sm:$0xff] }
  0xb6   : > { %1512 = vmatprep.subr.bf16.mxu0 %v1511_v28  ;;  %v1531_v28 = vpack.c.bf16 %v382_v21, %v380_v19  ;;  %v402_v19 = vld [vmem:[#allocation6 + $0x1b8] sm:$0xff] }
  0xb7   : > { %1642 = vmatpush1.bf16.msra.mxu1 %v1641_v55  ;;  %v1661_v55 = vpack.c.bf16 %v939_v47, %v937_v46  ;;  %v1551_v21 = vpack.c.bf16 %v402_v19, %v400_v18  ;;  %v664_v18 = vld [vmem:[#allocation6 + $0x4c0] sm:$0xff]  ;;  %v666_v19 = vld [vmem:[#allocation6 + $0x4d0] sm:$0xff] }
  0xb8   : > { %1644 = vmatprep.subr.bf16.mxu1 %v1643_v57  ;;  %v1663_v57 = vpack.c.bf16 %v944_v49, %v942_v48  ;;  %v644_v48 = vld [vmem:[#allocation6 + $0x420] sm:$0xff]  ;;  %v646_v49 = vld [vmem:[#allocation6 + $0x430] sm:$0xff] }
  0xb9   : > { %1514 = vmatpush1.bf16.msra.mxu0 %v1513_v38  ;;  %v1533_v38 = vpack.c.bf16 %v381_v1, %v379_v29  ;;  %v405_v29 = vld [vmem:[#allocation6 + $0x1d0] sm:$0xff]  ;;  %v408_v1 = vld [vmem:[#allocation6 + $0x1e8] sm:$0xff] }
  0xba   : > { %1516 = vmatprep.subr.bf16.mxu0 %v1515_v39  ;;  %v1535_v39 = vpack.c.bf16 %v386_v32, %v384_v2  ;;  %v410_v2 = vld [vmem:[#allocation6 + $0x1f8] sm:$0xff] }
  0xbb   : > { %1646 = vmatpush1.bf16.msra.mxu1 %v1645_v6  ;;  %v1665_v6 = vpack.c.bf16 %v943_v59, %v941_v58  ;;  %v1559_v32 = vpack.c.bf16 %v410_v2, %v408_v1  ;;  %v672_v1 = vld [vmem:[#allocation6 + $0x500] sm:$0xff]  ;;  %v674_v2 = vld [vmem:[#allocation6 + $0x510] sm:$0xff] }
  0xbc   : > { %1648 = vmatprep.subr.bf16.mxu1 %v1647_v8  ;;  %v1667_v8 = vpack.c.bf16 %v948_v61, %v946_v60  ;;  %v652_v60 = vld [vmem:[#allocation6 + $0x460] sm:$0xff]  ;;  %v654_v61 = vld [vmem:[#allocation6 + $0x470] sm:$0xff] }
  0xbd   : > { %1518 = vmatpush1.bf16.msra.mxu0 %v1517_v50  ;;  %v1537_v50 = vpack.c.bf16 %v385_v41, %v383_v40  ;;  %v640_v40 = vld [vmem:[#allocation6 + $0x400] sm:$0xff]  ;;  %v642_v41 = vld [vmem:[#allocation6 + $0x410] sm:$0xff]  ;;  %v1577_v3 = vpack.c.bf16 %v654_v61, %v652_v60  ;;  %v697_v60 = vld [vmem:[#allocation6 + $0x5c8] sm:$0xff] }
  0xbe   : > { %1520 = vmatprep.subr.bf16.mxu0 %v1519_v51  ;;  %v1539_v51 = vpack.c.bf16 %v390_v44, %v388_v42  ;;  %v712_v42 = vrot.slane %v636_v37, 2  ;;  %v645_v44 = vld [vmem:[#allocation6 + $0x428] sm:$0xff]  ;;  %v1565_v46 = vpack.c.bf16 %v642_v41, %v640_v40  ;;  %v680_v41 = vld [vmem:[#allocation6 + $0x540] sm:$0xff]  ;;  %v699_v61 = vld [vmem:[#allocation6 + $0x5d8] sm:$0xff] }
  0xbf   : > { %1650 = vmatpush1.bf16.msra.mxu1 %v1649_v20  ;;  %v681_v37 = vld [vmem:[#allocation6 + $0x548] sm:$0xff] }
  0xc0   : > { %1652 = vmatprep.subr.bf16.mxu1 %v1651_v22  ;;  %v399_v22 = vld [vmem:[#allocation6 + $0x1a0] sm:$0xff] }
  0xc1   : > { %1522 = vmatpush1.bf16.msra.mxu0 %v1521_v62  ;;  %v1541_v62 = vpack.c.bf16 %v389_v53, %v387_v52  ;;  %v1553_v26 = vpack.c.bf16 %v401_v23, %v399_v22  ;;  %v651_v52 = vld [vmem:[#allocation6 + $0x458] sm:$0xff]  ;;  %v1569_v53 = vpack.c.bf16 %v646_v49, %v644_v48  ;;  %v1589_v22 = vpack.c.bf16 %v666_v19, %v664_v18  ;;  %v686_v48 = vld [vmem:[#allocation6 + $0x570] sm:$0xff]  ;;  %v689_v49 = vld [vmem:[#allocation6 + $0x588] sm:$0xff] }
  0xc2   : > { %1524 = vmatprep.subr.bf16.mxu0 %v1523_v63  ;;  %v1543_v63 = vpack.c.bf16 %v394_v56, %v392_v54  ;;  %v648_v54 = vld [vmem:[#allocation6 + $0x440] sm:$0xff]  ;;  %v653_v56 = vld [vmem:[#allocation6 + $0x468] sm:$0xff]  ;;  %v952_v18 = vld [vmem:[#allocation8 + $0x378] sm:$0xff] }
  0xc3   : > { %1654 = vmatpush1.bf16.msra.mxu1 %v1653_v30 }
  0xc4   : > { %1656 = vmatprep.subr.bf16.mxu1 %v1655_v33  ;;  %v407_v33 = vld [vmem:[#allocation6 + $0x1e0] sm:$0xff] }
  0xc5   : > { %1526 = vmatpush1.bf16.msra.mxu0 %v1525_v15  ;;  %v395_v15 = vld [vmem:[#allocation6 + $0x180] sm:$0xff] }
  0xc6   : > { %1528 = vmatprep.subr.bf16.mxu0 %v1527_v16  ;;  %v397_v16 = vld [vmem:[#allocation6 + $0x190] sm:$0xff] }
  0xc7   : > { %1658 = vmatpush1.bf16.msra.mxu1 %v1657_v43  ;;  %v1549_v20 = vpack.c.bf16 %v397_v16, %v395_v15  ;;  %v713_v43 = vrot.slane %v2309_v11, 2  ;;  %v667_v15 = vld [vmem:[#allocation6 + $0x4d8] sm:$0xff] }
  0xc8   : > { %1660 = vmatprep.subr.bf16.mxu1 %v1659_v45  ;;  %v647_v45 = vld [vmem:[#allocation6 + $0x438] sm:$0xff] }
  0xc9   : > { %1530 = vmatpush1.bf16.msra.mxu0 %v1529_v27  ;;  %v1555_v27 = vpack.c.bf16 %v406_v25, %v404_v24  ;;  %v1567_v47 = vpack.c.bf16 %v647_v45, %v645_v44  ;;  %v668_v24 = vld [vmem:[#allocation6 + $0x4e0] sm:$0xff]  ;;  %v670_v25 = vld [vmem:[#allocation6 + $0x4f0] sm:$0xff]  ;;  %v687_v44 = vld [vmem:[#allocation6 + $0x578] sm:$0xff] }
  0xca   : > { %1532 = vmatprep.subr.bf16.mxu0 %v1531_v28  ;;  %v403_v28 = vld [vmem:[#allocation6 + $0x1c0] sm:$0xff] }
  0xcb   : > { %1662 = vmatpush1.bf16.msra.mxu1 %v1661_v55  ;;  %v1557_v30 = vpack.c.bf16 %v405_v29, %v403_v28  ;;  %v650_v55 = vld [vmem:[#allocation6 + $0x450] sm:$0xff]  ;;  %v1593_v28 = vpack.c.bf16 %v670_v25, %v668_v24  ;;  %v956_v24 = vld [vmem:[#allocation8 + $0x398] sm:$0xff] }
  0xcc   : > { %1664 = vmatprep.subr.bf16.mxu1 %v1663_v57  ;;  %v655_v57 = vld [vmem:[#allocation6 + $0x478] sm:$0xff]  ;;  %v1573_v58 = vpack.c.bf16 %v650_v55, %v648_v54  ;;  %v693_v54 = vld [vmem:[#allocation6 + $0x5a8] sm:$0xff] }
  0xcd   : > { %1534 = vmatpush1.bf16.msra.mxu0 %v1533_v38  ;;  %v1561_v38 = vpack.c.bf16 %v409_v34, %v407_v33  ;;  %v1575_v59 = vpack.c.bf16 %v655_v57, %v653_v56  ;;  %v1597_v33 = vpack.c.bf16 %v674_v2, %v672_v1  ;;  %v695_v55 = vld [vmem:[#allocation6 + $0x5b8] sm:$0xff]  ;;  %v957_v2 = vld [vmem:[#allocation8 + $0x3a0] sm:$0xff] }
  0xce   : > { %1536 = vmatprep.subr.bf16.mxu0 %v1535_v39  ;;  %v1563_v39 = vpack.c.bf16 %v643_v36, %v641_v35  ;;  %v676_v35 = vld [vmem:[#allocation6 + $0x520] sm:$0xff]  ;;  %v678_v36 = vld [vmem:[#allocation6 + $0x530] sm:$0xff]  ;;  %v1615_v57 = vpack.c.bf16 %v695_v55, %v693_v54 }
  0xcf   : > { %1666 = vmatpush1.bf16.msra.mxu1 %v1665_v6  ;;  %v661_v6 = vld [vmem:[#allocation6 + $0x4a8] sm:$0xff] }
  0xd0   : > { %1668 = vmatprep.subr.bf16.mxu1 %v1667_v8  ;;  %v1581_v8 = vpack.c.bf16 %v658_v5, %v656_v4  ;;  %v1583_v9 = vpack.c.bf16 %v663_v7, %v661_v6  ;;  %v701_v4 = vld [vmem:[#allocation6 + $0x5e8] sm:$0xff]  ;;  %v703_v5 = vld [vmem:[#allocation6 + $0x5f8] sm:$0xff] }
  0xd1   : > { %1538 = vmatpush1.bf16.msra.mxu0 %v1537_v50  ;;  %v714_v50 = vsel %vm708_vm2, %v712_v42, %v713_v43  ;;  %v682_v42 = vld [vmem:[#allocation6 + $0x550] sm:$0xff]  ;;  %v685_v43 = vld [vmem:[#allocation6 + $0x568] sm:$0xff]  ;;  %v1623_v7 = vpack.c.bf16 %v703_v5, %v701_v4 }
  0xd2   : > { %1540 = vmatprep.subr.bf16.mxu0 %v1539_v51  ;;  %v649_v51 = vld [vmem:[#allocation6 + $0x448] sm:$0xff]  ;;  %v1605_v45 = vpack.c.bf16 %v682_v42, %v680_v41  ;;  %v965_v42 = vld [vmem:[#allocation8 + $0x3e0] sm:$0xff]  ;;  %v838_v4 = vld [vmem:[#allocation8 + $0x10] sm:$0xff] }
  0xd3   : > { %1670 = vmatpush1.bf16.msra.mxu1 %v1669_v17  ;;  %v1571_v11 = vpack.c.bf16 %v651_v52, %v649_v51  ;;  %v841_v5 = vld [vmem:[#allocation8 + $0x28] sm:$0xff] }
  0xd5   : > { %1542 = vmatpush1.bf16.msra.mxu0 %v1541_v62  ;;  %v657_v62 = vld [vmem:[#allocation6 + $0x488] sm:$0xff] }
  0xd6   : > { %1544 = vmatprep.subr.bf16.mxu0 %v1543_v63  ;;  %v659_v63 = vld [vmem:[#allocation6 + $0x498] sm:$0xff] }
  0xd9   : > { %1546 = vmatpush1.bf16.msra.mxu0 %v1545_v13  ;;  %v662_v13 = vld [vmem:[#allocation6 + $0x4b0] sm:$0xff] }
  0xda   : > { %1548 = vmatprep.subr.bf16.mxu0 %v1547_v14  ;;  %v665_v14 = vld [vmem:[#allocation6 + $0x4c8] sm:$0xff]  ;;  %v1585_v16 = vpack.c.bf16 %v662_v13, %v660_v10  ;;  %v635_v10 = vld [vmem:[#allocation2] sm:$0xfc] }
  0xdb   : > { %v1587_v17 = vpack.c.bf16 %v667_v15, %v665_v14  ;;  %v709_v14 = vrot.slane %v635_v10, 2  ;;  %v710_v15 = vrot.slane %v2311_v12, 2  ;;  %v958_v12 = vld [vmem:[#allocation8 + $0x3a8] sm:$0xff] }
  0xdd   : > { %1550 = vmatpush1.bf16.msra.mxu0 %v1549_v20  ;;  %v669_v20 = vld [vmem:[#allocation6 + $0x4e8] sm:$0xff] }
  0xde   : > { %1552 = vmatprep.subr.bf16.mxu0 %v1551_v21  ;;  %v671_v21 = vld [vmem:[#allocation6 + $0x4f8] sm:$0xff] }
  0xdf   : > { %v1591_v23 = vpack.c.bf16 %v671_v21, %v669_v20  ;;  %v949_v20 = vld [vmem:[#allocation8 + $0x360] sm:$0xff]  ;;  %v951_v21 = vld [vmem:[#allocation8 + $0x370] sm:$0xff] }
  0xe1   : > { %1554 = vmatpush1.bf16.msra.mxu0 %v1553_v26  ;;  %v673_v26 = vld [vmem:[#allocation6 + $0x508] sm:$0xff] }
  0xe2   : > { %1556 = vmatprep.subr.bf16.mxu0 %v1555_v27  ;;  %v675_v27 = vld [vmem:[#allocation6 + $0x518] sm:$0xff] }
  0xe3   : > { %v1595_v29 = vpack.c.bf16 %v675_v27, %v673_v26  ;;  %v953_v26 = vld [vmem:[#allocation8 + $0x380] sm:$0xff]  ;;  %v955_v27 = vld [vmem:[#allocation8 + $0x390] sm:$0xff] }
  0xe5   : > { %1558 = vmatpush1.bf16.msra.mxu0 %v1557_v30  ;;  %v677_v30 = vld [vmem:[#allocation6 + $0x528] sm:$0xff] }
  0xe6   : > { %1560 = vmatprep.subr.bf16.mxu0 %v1559_v32  ;;  %v679_v32 = vld [vmem:[#allocation6 + $0x538] sm:$0xff] }
  0xe7   : > { %v1599_v34 = vpack.c.bf16 %v679_v32, %v677_v30  ;;  %v959_v30 = vld [vmem:[#allocation8 + $0x3b0] sm:$0xff] }
  0xe8   : > { %v1681_v32 = vpack.c.bf16 %v959_v30, %v957_v2 }
  0xe9   : > { %1562 = vmatpush1.bf16.msra.mxu0 %v1561_v38  ;;  %v683_v38 = vld [vmem:[#allocation6 + $0x558] sm:$0xff] }
  0xea   : > { %1564 = vmatprep.subr.bf16.mxu0 %v1563_v39  ;;  %v1601_v39 = vpack.c.bf16 %v678_v36, %v676_v35  ;;  %v1603_v40 = vpack.c.bf16 %v683_v38, %v681_v37  ;;  %v961_v35 = vld [vmem:[#allocation8 + $0x3c0] sm:$0xff]  ;;  %v963_v37 = vld [vmem:[#allocation8 + $0x3d0] sm:$0xff]  ;;  %v966_v38 = vld [vmem:[#allocation8 + $0x3e8] sm:$0xff] }
  0xec   : > { %629 = vmatmul.mubr.f32.vlgmr.msra.gmra.mrb[0].mxu0 %v2303_v31  ;;  %v1579_v31 = vpack.c.bf16 %v659_v63, %v657_v62  ;;  %v1619_v63 = vpack.c.bf16 %v699_v61, %v697_v60 }
  0xed   : > { %1566 = vmatpush1.bf16.msra.mxu0 %v1565_v46  ;;  %781 = vmatprep.mubr.f32.mxu0 %v714_v50  ;;  %v1607_v46 = vpack.c.bf16 %v687_v44, %v685_v43  ;;  %v691_v50 = vld [vmem:[#allocation6 + $0x598] sm:$0xff]  ;;  %v967_v43 = vld [vmem:[#allocation8 + $0x3f0] sm:$0xff] }
  0xee   : > { %1568 = vmatprep.subr.bf16.mxu0 %v1567_v47  ;;  %v684_v47 = vld [vmem:[#allocation6 + $0x560] sm:$0xff]  ;;  %v1611_v52 = vpack.c.bf16 %v691_v50, %v689_v49  ;;  %v1689_v44 = vpack.c.bf16 %v967_v43, %v965_v42 }
  0xef   : > { %v1609_v51 = vpack.c.bf16 %v686_v48, %v684_v47  ;;  %v793_v48 = vshrl.u32 %v326_v0, 7  ;;  %v790_v50 = vld [vmem:[%s2405_s3] sm:$0x3] }
  0xf1   : > { %1570 = vmatpush1.bf16.msra.mxu0 %v1569_v53  ;;  %v688_v53 = vld [vmem:[#allocation6 + $0x580] sm:$0xff]  ;;  %v2322_v49 = vsub.s32 0, %v793_v48 }
  0xf2   : > { %1572 = vmatprep.subr.bf16.mxu0 %v1571_v11  ;;  %v690_v11 = vld [vmem:[#allocation6 + $0x590] sm:$0xff] }
  0xf3   : > { %v1613_v56 = vpack.c.bf16 %v690_v11, %v688_v53  ;;  %v795_v53 = vrot.slane %v790_v50, %v2322_v49 }
  0xf5   : > { %1574 = vmatpush1.bf16.msra.mxu0 %v1573_v58  ;;  %v692_v58 = vld [vmem:[#allocation6 + $0x5a0] sm:$0xff] }
  0xf6   : > { %1576 = vmatprep.subr.bf16.mxu0 %v1575_v59  ;;  %v694_v59 = vld [vmem:[#allocation6 + $0x5b0] sm:$0xff] }
  0xf7   : > { %v1617_v62 = vpack.c.bf16 %v694_v59, %v692_v58 }
  0xf9   : > { %1578 = vmatpush1.bf16.msra.mxu0 %v1577_v3  ;;  %v696_v3 = vld [vmem:[#allocation6 + $0x5c0] sm:$0xff] }
  0xfa   : > { %1580 = vmatprep.subr.bf16.mxu0 %v1579_v31  ;;  %v698_v31 = vld [vmem:[#allocation6 + $0x5d0] sm:$0xff] }
  0xfb   : > { %v1621_v6 = vpack.c.bf16 %v698_v31, %v696_v3  ;;  %v836_v31 = vld [vmem:[#allocation8] sm:$0xff] }
  0xfd   : > { %1582 = vmatpush1.bf16.msra.mxu0 %v1581_v8  ;;  %v700_v8 = vld [vmem:[#allocation6 + $0x5e0] sm:$0xff] }
  0xfe   : > { %1584 = vmatprep.subr.bf16.mxu0 %v1583_v9  ;;  %v702_v9 = vld [vmem:[#allocation6 + $0x5f0] sm:$0xff] }
  0xff   : > { %v1625_v13 = vpack.c.bf16 %v702_v9, %v700_v8  ;;  %v843_v8 = vld [vmem:[#allocation8 + $0x38] sm:$0xff] }
 0x101   : > { %1586 = vmatpush1.bf16.msra.mxu0 %v1585_v16  ;;  %v711_v16 = vsel %vm708_vm2, %v709_v14, %v710_v15 }
 0x102   : > { %1588 = vmatprep.subr.bf16.mxu0 %v1587_v17  ;;  %v950_v17 = vld [vmem:[#allocation8 + $0x368] sm:$0xff] }
 0x103   : > { %v1671_v19 = vpack.c.bf16 %v952_v18, %v950_v17  ;;  %v1693_v17 = vpack.c.bf16 %v838_v4, %v836_v31  ;;  %v875_v31 = vld [vmem:[#allocation8 + $0x138] sm:$0xff] }
 0x105   : > { %1590 = vmatpush1.bf16.msra.mxu0 %v1589_v22  ;;  %v1673_v22 = vpack.c.bf16 %v951_v21, %v949_v20  ;;  %1672 = vmatprep.subr.bf16.mxu1 %v1671_v19  ;;  %v1695_v19 = vpack.c.bf16 %v843_v8, %v841_v5  ;;  %v840_v20 = vld [vmem:[#allocation8 + $0x20] sm:$0xff]  ;;  %v842_v21 = vld [vmem:[#allocation8 + $0x30] sm:$0xff]  ;;  %v877_v8 = vld [vmem:[#allocation8 + $0x148] sm:$0xff] }
 0x106   : > { %1592 = vmatprep.subr.bf16.mxu0 %v1591_v23  ;;  %v954_v23 = vld [vmem:[#allocation8 + $0x388] sm:$0xff] }
 0x107   : > { %1674 = vmatpush1.bf16.msra.mxu1 %v1673_v22  ;;  %v1675_v25 = vpack.c.bf16 %v956_v24, %v954_v23  ;;  %v845_v23 = vld [vmem:[#allocation8 + $0x48] sm:$0xff]  ;;  %v847_v24 = vld [vmem:[#allocation8 + $0x58] sm:$0xff] }
 0x109   : > { %1594 = vmatpush1.bf16.msra.mxu0 %v1593_v28  ;;  %v1677_v28 = vpack.c.bf16 %v955_v27, %v953_v26  ;;  %1676 = vmatprep.subr.bf16.mxu1 %v1675_v25  ;;  %v1697_v26 = vpack.c.bf16 %v842_v21, %v840_v20  ;;  %v1699_v27 = vpack.c.bf16 %v847_v24, %v845_v23  ;;  %v880_v20 = vld [vmem:[#allocation8 + $0x160] sm:$0xff]  ;;  %v882_v21 = vld [vmem:[#allocation8 + $0x170] sm:$0xff]  ;;  %v887_v23 = vld [vmem:[#allocation8 + $0x198] sm:$0xff] }
 0x10a   : > { %1596 = vmatprep.subr.bf16.mxu0 %v1595_v29  ;;  %v960_v29 = vld [vmem:[#allocation8 + $0x3b8] sm:$0xff]  ;;  %v1737_v24 = vpack.c.bf16 %v882_v21, %v880_v20  ;;  %v1149_v20 = vld [vmem:[#allocation8 + $0x4a8] sm:$0xff] }
 0x10b   : > { %1678 = vmatpush1.bf16.msra.mxu1 %v1677_v28  ;;  %v1679_v1 = vpack.c.bf16 %v960_v29, %v958_v12  ;;  %v844_v28 = vld [vmem:[#allocation8 + $0x40] sm:$0xff]  ;;  %v846_v12 = vld [vmem:[#allocation8 + $0x50] sm:$0xff]  ;;  %v849_v29 = vld [vmem:[#allocation8 + $0x68] sm:$0xff] }
 0x10c   : > { %v1701_v2 = vpack.c.bf16 %v846_v12, %v844_v28  ;;  %v889_v28 = vld [vmem:[#allocation8 + $0x1a8] sm:$0xff]  ;;  %v891_v12 = vld [vmem:[#allocation8 + $0x1b8] sm:$0xff] }
 0x10d   : > { %1598 = vmatpush1.bf16.msra.mxu0 %v1597_v33  ;;  %1680 = vmatprep.subr.bf16.mxu1 %v1679_v1  ;;  %v962_v33 = vld [vmem:[#allocation8 + $0x3c8] sm:$0xff]  ;;  %v851_v1 = vld [vmem:[#allocation8 + $0x78] sm:$0xff] }
 0x10e   : > { %1600 = vmatprep.subr.bf16.mxu0 %v1599_v34  ;;  %v964_v34 = vld [vmem:[#allocation8 + $0x3d8] sm:$0xff]  ;;  %v1703_v30 = vpack.c.bf16 %v851_v1, %v849_v29  ;;  %v1743_v1 = vpack.c.bf16 %v891_v12, %v889_v28 }
 0x10f   : > { %1682 = vmatpush1.bf16.msra.mxu1 %v1681_v32  ;;  %v1683_v36 = vpack.c.bf16 %v964_v34, %v962_v33  ;;  %v848_v32 = vld [vmem:[#allocation8 + $0x60] sm:$0xff]  ;;  %v850_v33 = vld [vmem:[#allocation8 + $0x70] sm:$0xff]  ;;  %v853_v34 = vld [vmem:[#allocation8 + $0x88] sm:$0xff] }
 0x110   : > { %v1151_v21 = vld [vmem:[#allocation8 + $0x4b8] sm:$0xff] }
 0x111   : > { %1602 = vmatpush1.bf16.msra.mxu0 %v1601_v39  ;;  %v968_v39 = vld [vmem:[#allocation8 + $0x3f8] sm:$0xff]  ;;  %1684 = vmatprep.subr.bf16.mxu1 %v1683_v36  ;;  %v1705_v36 = vpack.c.bf16 %v850_v33, %v848_v32  ;;  %v893_v32 = vld [vmem:[#allocation8 + $0x1c8] sm:$0xff] }
 0x112   : > { %1604 = vmatprep.subr.bf16.mxu0 %v1603_v40  ;;  %v1685_v40 = vpack.c.bf16 %v963_v37, %v961_v35  ;;  %v1687_v41 = vpack.c.bf16 %v968_v39, %v966_v38  ;;  %v855_v35 = vld [vmem:[#allocation8 + $0x98] sm:$0xff]  ;;  %v852_v38 = vld [vmem:[#allocation8 + $0x80] sm:$0xff]  ;;  %v854_v39 = vld [vmem:[#allocation8 + $0x90] sm:$0xff] }
 0x113   : > { %v1707_v37 = vpack.c.bf16 %v855_v35, %v853_v34  ;;  %v1709_v42 = vpack.c.bf16 %v854_v39, %v852_v38  ;;  %v895_v33 = vld [vmem:[#allocation8 + $0x1d8] sm:$0xff]  ;;  %v897_v38 = vld [vmem:[#allocation8 + $0x1e8] sm:$0xff] }
 0x114   : > { %1686 = vmatpush1.bf16.msra.mxu1 %v1685_v40  ;;  %v857_v40 = vld [vmem:[#allocation8 + $0xa8] sm:$0xff]  ;;  %v1747_v35 = vpack.c.bf16 %v895_v33, %v893_v32  ;;  %v899_v39 = vld [vmem:[#allocation8 + $0x1f8] sm:$0xff] }
 0x115   : > { %1606 = vmatpush1.bf16.msra.mxu0 %v1605_v45  ;;  %1688 = vmatprep.subr.bf16.mxu1 %v1687_v41  ;;  %v837_v45 = vld [vmem:[#allocation8 + $0x8] sm:$0xff]  ;;  %v859_v41 = vld [vmem:[#allocation8 + $0xb8] sm:$0xff] }
 0x116   : > { %1608 = vmatprep.subr.bf16.mxu0 %v1607_v46  ;;  %v839_v46 = vld [vmem:[#allocation8 + $0x18] sm:$0xff]  ;;  %v1711_v43 = vpack.c.bf16 %v859_v41, %v857_v40  ;;  %v1751_v41 = vpack.c.bf16 %v899_v39, %v897_v38 }
 0x117   : > { %v1691_v47 = vpack.c.bf16 %v839_v46, %v837_v45  ;;  %v858_v45 = vld [vmem:[#allocation8 + $0xb0] sm:$0xff]  ;;  %v861_v46 = vld [vmem:[#allocation8 + $0xc8] sm:$0xff] }
 0x118   : > { %1690 = vmatpush1.bf16.msra.mxu1 %v1689_v44  ;;  %v856_v44 = vld [vmem:[#allocation8 + $0xa0] sm:$0xff] }
 0x119   : > { %1610 = vmatpush1.bf16.msra.mxu0 %v1609_v51  ;;  %1692 = vmatprep.subr.bf16.mxu1 %v1691_v47  ;;  %v2327_v51 = vsub.s32 1, %v793_v48  ;;  %v863_v47 = vld [vmem:[#allocation8 + $0xd8] sm:$0xff]  ;;  %v1713_v48 = vpack.c.bf16 %v858_v45, %v856_v44  ;;  %v1129_v44 = vld [vmem:[#allocation8 + $0x408] sm:$0xff] }
 0x11a   : > { %1612 = vmatprep.subr.bf16.mxu0 %v1611_v52  ;;  %v804_v52 = vld [vmem:[%s2406_s4] sm:$0x3]  ;;  %v1131_v45 = vld [vmem:[#allocation8 + $0x418] sm:$0xff] }
 0x11b   : > { %v799_v11 = vrot.slane %v790_v50, %v2327_v51  ;;  %v809_v54 = vrot.slane %v804_v52, %v2322_v49  ;;  %v813_v0 = vrot.slane %v804_v52, %v2327_v51  ;;  %v1715_v50 = vpack.c.bf16 %v863_v47, %v861_v46  ;;  %v860_v52 = vld [vmem:[#allocation8 + $0xc0] sm:$0xff] }
 0x11d   : > { %1614 = vmatpush1.bf16.msra.mxu0 %v1613_v56 }
 0x11e   : > { %1616 = vmatprep.subr.bf16.mxu0 %v1615_v57 }
 0x121   : > { %1618 = vmatpush1.bf16.msra.mxu0 %v1617_v62 }
 0x122   : > { %1620 = vmatprep.subr.bf16.mxu0 %v1619_v63 }
 0x125   : > { %1622 = vmatpush1.bf16.msra.mxu0 %v1621_v6 }
 0x126   : > { %1624 = vmatprep.subr.bf16.mxu0 %v1623_v7 }
 0x129   : > { %1626 = vmatpush1.bf16.msra.mxu0 %v1625_v13 }
 0x12c   : > { %782 = vmatmul.mubr.f32.vlgmr.msra.gmra.mrb[0].mxu0 %v711_v16 }
 0x1ff   : > { %v783_v55 = vpop.f32.mrb[0].mxu0 }
 0x200   : > { %v802_v56 = vmul.f32 %v795_v53, %v783_v55  ;;  %v785_v57 = vpop.f32.mrb[1].mxu0  ;;  %v862_v53 = vld [vmem:[#allocation8 + $0xd0] sm:$0xff] }
 0x201   : > { %v803_v58 = vmul.f32 %v799_v11, %v785_v57  ;;  %v865_v11 = vld [vmem:[#allocation8 + $0xe8] sm:$0xff]  ;;  %v1717_v55 = vpack.c.bf16 %v862_v53, %v860_v52  ;;  %v866_v57 = vld [vmem:[#allocation8 + $0xf0] sm:$0xff]  ;;  %v1128_v52 = vld [vmem:[#allocation8 + $0x400] sm:$0xff] }
 0x202   : > { %v816_v59 = vadd.f32 %v809_v54, %v802_v56  ;;  %v867_v54 = vld [vmem:[#allocation8 + $0xf8] sm:$0xff]  ;;  %v864_v56 = vld [vmem:[#allocation8 + $0xe0] sm:$0xff]  ;;  %v1130_v53 = vld [vmem:[#allocation8 + $0x410] sm:$0xff] }
 0x203   : > { %v817_v60 = vadd.f32 %v813_v0, %v803_v58  ;;  %v1719_v0 = vpack.c.bf16 %v867_v54, %v865_v11  ;;  %v869_v58 = vld [vmem:[#allocation8 + $0x108] sm:$0xff]  ;;  %v1135_v54 = vld [vmem:[#allocation8 + $0x438] sm:$0xff] }
 0x204   : > { %v818_v61 = vmax.f32 %v816_v59, 0.0  ;;  %v871_v59 = vld [vmem:[#allocation8 + $0x118] sm:$0xff]  ;;  %v1133_v11 = vld [vmem:[#allocation8 + $0x428] sm:$0xff] }
 0x205   : > { %v819_v62 = vmax.f32 %v817_v60, 0.0  ;;  %v1721_v60 = vpack.c.bf16 %v866_v57, %v864_v56  ;;  %v1757_v56 = vpack.c.bf16 %v1130_v53, %v1128_v52  ;;  %v1759_v57 = vpack.c.bf16 %v1135_v54, %v1133_v11  ;;  %v1168_v11 = vld [vmem:[#allocation8 + $0x540] sm:$0xff]  ;;  %v1170_v54 = vld [vmem:[#allocation8 + $0x550] sm:$0xff] }
 0x206   : > { %v826_v63 = vrot.slane %v818_v61, 7  ;;  %v1723_v61 = vpack.c.bf16 %v871_v59, %v869_v58  ;;  %v1132_v58 = vld [vmem:[#allocation8 + $0x420] sm:$0xff]  ;;  %v1134_v59 = vld [vmem:[#allocation8 + $0x430] sm:$0xff] }
 0x207   : > { %v827_v3 = vrot.slane %v819_v62, 7  ;;  %v868_v62 = vld [vmem:[#allocation8 + $0x100] sm:$0xff] }
 0x208   : > { %830 = vst [vmem:[#allocation2] sm:$0xfe] %v826_v63  ;;  %832 = vst [vmem:[#allocation2 + $0x10] sm:$0x1] %v826_v63  ;;  %v870_v63 = vld [vmem:[#allocation8 + $0x110] sm:$0xff] }
 0x209   : > { %831 = vst [vmem:[#allocation2 + $0x8] sm:$0xfe] %v827_v3  ;;  %833 = vst [vmem:[#allocation2 + $0x18] sm:$0x1] %v827_v3  ;;  %v873_v3 = vld [vmem:[#allocation8 + $0x128] sm:$0xff]  ;;  %v1725_v4 = vpack.c.bf16 %v870_v63, %v868_v62  ;;  %v1139_v62 = vld [vmem:[#allocation8 + $0x458] sm:$0xff] }
 0x20a   : > { %v1727_v5 = vpack.c.bf16 %v875_v31, %v873_v3  ;;  %v1761_v3 = vpack.c.bf16 %v1134_v59, %v1132_v58  ;;  %v1172_v58 = vld [vmem:[#allocation8 + $0x560] sm:$0xff]  ;;  %v1174_v59 = vld [vmem:[#allocation8 + $0x570] sm:$0xff] }
 0x20f   : > { %v900_v6 = vld [vmem:[#allocation2] sm:$0xfe]  ;;  %v902_v7 = vld [vmem:[#allocation2 + $0x10] sm:$0x1] }
 0x210   : > { %v901_v9 = vld [vmem:[#allocation2 + $0x8] sm:$0xfe]  ;;  %v903_v10 = vld [vmem:[#allocation2 + $0x18] sm:$0x1]  ;;  %v973_v13 = vrot.slane %v900_v6, 1  ;;  %v974_v14 = vrot.slane %v902_v7, 1 }
 0x211   : > { %v976_v15 = vrot.slane %v901_v9, 1  ;;  %v977_v16 = vrot.slane %v903_v10, 1  ;;  %v835_v25 = vld [vmem:[#allocation2 + $0x8] sm:$0xff]  ;;  %v872_v6 = vld [vmem:[#allocation8 + $0x120] sm:$0xff]  ;;  %v874_v7 = vld [vmem:[#allocation8 + $0x130] sm:$0xff] }
 0x212   : > { %v975_v22 = vsel %vm484_vm1, %v973_v13, %v974_v14  ;;  %v879_v9 = vld [vmem:[#allocation8 + $0x158] sm:$0xff]  ;;  %v1729_v10 = vpack.c.bf16 %v874_v7, %v872_v6  ;;  %v876_v14 = vld [vmem:[#allocation8 + $0x140] sm:$0xff]  ;;  %v1124_v47 = vld [vmem:[#allocation2 + $0x8] sm:$0xfc] }
 0x213   : > { %v978_v18 = vsel %vm484_vm1, %v976_v15, %v977_v16  ;;  %v1731_v13 = vpack.c.bf16 %v879_v9, %v877_v8  ;;  %v878_v15 = vld [vmem:[#allocation8 + $0x150] sm:$0xff]  ;;  %v881_v16 = vld [vmem:[#allocation8 + $0x168] sm:$0xff]  ;;  %v1143_v7 = vld [vmem:[#allocation8 + $0x478] sm:$0xff] }
 0x214   : > { %1045 = vmatprep.mubr.f32.mxu1 %v978_v18  ;;  %v1733_v18 = vpack.c.bf16 %v878_v15, %v876_v14  ;;  %v1141_v6 = vld [vmem:[#allocation8 + $0x468] sm:$0xff]  ;;  %v1147_v15 = vld [vmem:[#allocation8 + $0x498] sm:$0xff] }
 0x215   : > { %1046 = vmatmul.mubr.f32.vlgmr.msra.gmra.mrb[0].mxu1 %v975_v22  ;;  %v885_v22 = vld [vmem:[#allocation8 + $0x188] sm:$0xff]  ;;  %v1767_v9 = vpack.c.bf16 %v1143_v7, %v1141_v6 }
 0x216   : > { %1694 = vmatpush1.bf16.msra.mxu1 %v1693_v17  ;;  %1116 = vmatprep.mubr.f32.mxu1 %v835_v25  ;;  %v883_v17 = vld [vmem:[#allocation8 + $0x178] sm:$0xff]  ;;  %v1739_v25 = vpack.c.bf16 %v887_v23, %v885_v22  ;;  %v1145_v14 = vld [vmem:[#allocation8 + $0x488] sm:$0xff]  ;;  %v1775_v23 = vpack.c.bf16 %v1151_v21, %v1149_v20 }
 0x217   : > { %1696 = vmatprep.subr.bf16.mxu1 %v1695_v19  ;;  %v1735_v19 = vpack.c.bf16 %v883_v17, %v881_v16  ;;  %v1771_v17 = vpack.c.bf16 %v1147_v15, %v1145_v14 }
 0x21a   : > { %1698 = vmatpush1.bf16.msra.mxu1 %v1697_v26  ;;  %v884_v26 = vld [vmem:[#allocation8 + $0x180] sm:$0xff] }
 0x21b   : > { %1700 = vmatprep.subr.bf16.mxu1 %v1699_v27  ;;  %v886_v27 = vld [vmem:[#allocation8 + $0x190] sm:$0xff] }
 0x21c   : > { %v1741_v29 = vpack.c.bf16 %v886_v27, %v884_v26  ;;  %v1153_v26 = vld [vmem:[#allocation8 + $0x4c8] sm:$0xff]  ;;  %v1155_v27 = vld [vmem:[#allocation8 + $0x4d8] sm:$0xff] }
 0x21d   : > { %v1779_v12 = vpack.c.bf16 %v1155_v27, %v1153_v26 }
 0x21e   : > { %1702 = vmatpush1.bf16.msra.mxu1 %v1701_v2  ;;  %v888_v2 = vld [vmem:[#allocation8 + $0x1a0] sm:$0xff] }
 0x21f   : > { %1704 = vmatprep.subr.bf16.mxu1 %v1703_v30  ;;  %v890_v30 = vld [vmem:[#allocation8 + $0x1b0] sm:$0xff] }
 0x220   : > { %v1745_v34 = vpack.c.bf16 %v890_v30, %v888_v2  ;;  %v1157_v2 = vld [vmem:[#allocation8 + $0x4e8] sm:$0xff]  ;;  %v1159_v30 = vld [vmem:[#allocation8 + $0x4f8] sm:$0xff] }
 0x221   : > { %v1783_v33 = vpack.c.bf16 %v1159_v30, %v1157_v2 }
 0x222   : > { %1706 = vmatpush1.bf16.msra.mxu1 %v1705_v36  ;;  %v892_v36 = vld [vmem:[#allocation8 + $0x1c0] sm:$0xff] }
 0x223   : > { %1708 = vmatprep.subr.bf16.mxu1 %v1707_v37  ;;  %v894_v37 = vld [vmem:[#allocation8 + $0x1d0] sm:$0xff] }
 0x224   : > { %v1749_v40 = vpack.c.bf16 %v894_v37, %v892_v36  ;;  %v1161_v36 = vld [vmem:[#allocation8 + $0x508] sm:$0xff]  ;;  %v1163_v37 = vld [vmem:[#allocation8 + $0x518] sm:$0xff] }
 0x225   : > { %v1787_v39 = vpack.c.bf16 %v1163_v37, %v1161_v36 }
 0x226   : > { %1710 = vmatpush1.bf16.msra.mxu1 %v1709_v42  ;;  %v896_v42 = vld [vmem:[#allocation8 + $0x1e0] sm:$0xff] }
 0x227   : > { %1712 = vmatprep.subr.bf16.mxu1 %v1711_v43  ;;  %v898_v43 = vld [vmem:[#allocation8 + $0x1f0] sm:$0xff] }
 0x228   : > { %v1753_v46 = vpack.c.bf16 %v898_v43, %v896_v42  ;;  %v1165_v42 = vld [vmem:[#allocation8 + $0x528] sm:$0xff]  ;;  %v1167_v43 = vld [vmem:[#allocation8 + $0x538] sm:$0xff] }
 0x22a   : > { %1714 = vmatpush1.bf16.msra.mxu1 %v1713_v48  ;;  %v1126_v48 = vld [vmem:[#allocation2 + $0x18] sm:$0x3] }
 0x22b   : > { %1716 = vmatprep.subr.bf16.mxu1 %v1715_v50  ;;  %v1755_v50 = vpack.c.bf16 %v1131_v45, %v1129_v44  ;;  %v1791_v45 = vpack.c.bf16 %v1167_v43, %v1165_v42  ;;  %v1898_v42 = vld [vmem:[%s2279_s29 + $0x8] sm:$0xff] }
 0x22e   : > { %1718 = vmatpush1.bf16.msra.mxu1 %v1717_v55  ;;  %v1199_v55 = vrot.slane %v1124_v47, 2  ;;  %v1166_v47 = vld [vmem:[#allocation8 + $0x530] sm:$0xff] }
 0x22f   : > { %1720 = vmatprep.subr.bf16.mxu1 %v1719_v0  ;;  %v1200_v0 = vrot.slane %v1126_v48, 2  ;;  %v1169_v48 = vld [vmem:[#allocation8 + $0x548] sm:$0xff] }
 0x231   : > { %v1201_v63 = vsel %vm708_vm2, %v1199_v55, %v1200_v0  ;;  %v1173_v55 = vld [vmem:[#allocation8 + $0x568] sm:$0xff]  ;;  %v1175_v0 = vld [vmem:[#allocation8 + $0x578] sm:$0xff] }
 0x232   : > { %1722 = vmatpush1.bf16.msra.mxu1 %v1721_v60  ;;  %v834_v60 = vld [vmem:[#allocation2] sm:$0xff] }
 0x233   : > { %1724 = vmatprep.subr.bf16.mxu1 %v1723_v61  ;;  %v1137_v61 = vld [vmem:[#allocation8 + $0x448] sm:$0xff] }
 0x234   : > { %v1763_v31 = vpack.c.bf16 %v1139_v62, %v1137_v61  ;;  %v1179_v61 = vld [vmem:[#allocation8 + $0x598] sm:$0xff]  ;;  %v1801_v62 = vpack.c.bf16 %v1174_v59, %v1172_v58 }
 0x236   : > { %1726 = vmatpush1.bf16.msra.mxu1 %v1725_v4  ;;  %v1136_v4 = vld [vmem:[#allocation8 + $0x440] sm:$0xff] }
 0x237   : > { %1728 = vmatprep.subr.bf16.mxu1 %v1727_v5  ;;  %v1138_v5 = vld [vmem:[#allocation8 + $0x450] sm:$0xff] }
 0x238   : > { %v1765_v8 = vpack.c.bf16 %v1138_v5, %v1136_v4  ;;  %v1181_v4 = vld [vmem:[#allocation8 + $0x5a8] sm:$0xff]  ;;  %v1183_v5 = vld [vmem:[#allocation8 + $0x5b8] sm:$0xff] }
 0x239   : > { %v1807_v7 = vpack.c.bf16 %v1183_v5, %v1181_v4 }
 0x23a   : > { %1730 = vmatpush1.bf16.msra.mxu1 %v1729_v10  ;;  %v1140_v10 = vld [vmem:[#allocation8 + $0x460] sm:$0xff] }
 0x23b   : > { %1732 = vmatprep.subr.bf16.mxu1 %v1731_v13  ;;  %v1142_v13 = vld [vmem:[#allocation8 + $0x470] sm:$0xff] }
 0x23c   : > { %v1769_v16 = vpack.c.bf16 %v1142_v13, %v1140_v10  ;;  %v1185_v10 = vld [vmem:[#allocation8 + $0x5c8] sm:$0xff]  ;;  %v1187_v13 = vld [vmem:[#allocation8 + $0x5d8] sm:$0xff] }
 0x23d   : > { %v1811_v15 = vpack.c.bf16 %v1187_v13, %v1185_v10 }
 0x23e   : > { %1734 = vmatpush1.bf16.msra.mxu1 %v1733_v18  ;;  %v1144_v18 = vld [vmem:[#allocation8 + $0x480] sm:$0xff] }
 0x23f   : > { %1736 = vmatprep.subr.bf16.mxu1 %v1735_v19  ;;  %v1146_v19 = vld [vmem:[#allocation8 + $0x490] sm:$0xff] }
 0x240   : > { %v1773_v22 = vpack.c.bf16 %v1146_v19, %v1144_v18  ;;  %v1189_v18 = vld [vmem:[#allocation8 + $0x5e8] sm:$0xff]  ;;  %v1191_v19 = vld [vmem:[#allocation8 + $0x5f8] sm:$0xff] }
 0x241   : > { %v1815_v21 = vpack.c.bf16 %v1191_v19, %v1189_v18 }
 0x242   : > { %1738 = vmatpush1.bf16.msra.mxu1 %v1737_v24  ;;  %v1148_v24 = vld [vmem:[#allocation8 + $0x4a0] sm:$0xff] }
 0x243   : > { %1740 = vmatprep.subr.bf16.mxu1 %v1739_v25  ;;  %v1150_v25 = vld [vmem:[#allocation8 + $0x4b0] sm:$0xff] }
 0x244   : > { %v1777_v28 = vpack.c.bf16 %v1150_v25, %v1148_v24  ;;  %v1123_v24 = vld [vmem:[#allocation2] sm:$0xfc]  ;;  %v1125_v25 = vld [vmem:[#allocation2 + $0x10] sm:$0x3] }
 0x245   : > { %v1196_v27 = vrot.slane %v1123_v24, 2 }
 0x246   : > { %1742 = vmatpush1.bf16.msra.mxu1 %v1741_v29  ;;  %v1152_v29 = vld [vmem:[#allocation8 + $0x4c0] sm:$0xff] }
 0x247   : > { %1744 = vmatprep.subr.bf16.mxu1 %v1743_v1  ;;  %v1154_v1 = vld [vmem:[#allocation8 + $0x4d0] sm:$0xff] }
 0x248   : > { %v1781_v32 = vpack.c.bf16 %v1154_v1, %v1152_v29  ;;  %v1277_v29 = vld [vmem:[%s2407_s5] sm:$0x3] }
 0x249   : > { %v1291_v1 = vld [vmem:[%s2408_s6] sm:$0x3]  ;;  %v1282_v2 = vrot.slane %v1277_v29, %v2322_v49  ;;  %v1286_v30 = vrot.slane %v1277_v29, %v2327_v51 }
 0x24a   : > { %1746 = vmatpush1.bf16.msra.mxu1 %v1745_v34  ;;  %v1156_v34 = vld [vmem:[#allocation8 + $0x4e0] sm:$0xff] }
 0x24b   : > { %1748 = vmatprep.subr.bf16.mxu1 %v1747_v35  ;;  %v1158_v35 = vld [vmem:[#allocation8 + $0x4f0] sm:$0xff] }
 0x24c   : > { %v1785_v38 = vpack.c.bf16 %v1158_v35, %v1156_v34  ;;  %v1300_v34 = vrot.slane %v1291_v1, %v2327_v51 }
 0x24e   : > { %1750 = vmatpush1.bf16.msra.mxu1 %v1749_v40  ;;  %v1160_v40 = vld [vmem:[#allocation8 + $0x500] sm:$0xff] }
 0x24f   : > { %1752 = vmatprep.subr.bf16.mxu1 %v1751_v41  ;;  %v1162_v41 = vld [vmem:[#allocation8 + $0x510] sm:$0xff] }
 0x250   : > { %v1789_v44 = vpack.c.bf16 %v1162_v41, %v1160_v40  ;;  %v1897_v40 = vld [vmem:[%s2279_s29] sm:$0xff]  ;;  %s1989_s29 = sshll.u32 %s2063_s14, 4  ;;  %s1990_s29 = int_to_ptr.vmem [resolvable:$false] %s1989_s29 }
 0x251   : > { %s1991_s22 = scalar_lea.vmem %s1990_s29, 512  ;;  %p1992_p7 = scmp.lt.s32.totalorder %s2360_s23, %s1990_s29 }
 0x252   : > { %1754 = vmatpush1.bf16.msra.mxu1 %v1753_v46  ;;  %v1164_v46 = vld [vmem:[#allocation8 + $0x520] sm:$0xff]  ;;  %p1993_p9 = scmp.lt.s32.totalorder %s1991_s22, %s1985_s11 }
 0x253   : > { %1756 = vmatprep.subr.bf16.mxu1 %v1755_v50  ;;  %v1171_v50 = vld [vmem:[#allocation8 + $0x558] sm:$0xff]  ;;  %v1793_v52 = vpack.c.bf16 %v1166_v47, %v1164_v46 }
 0x254   : > { %v1795_v53 = vpack.c.bf16 %v1171_v50, %v1169_v48  ;;  %p1994_p12 = por %p1993_p9, %p1992_p7 }
 0x255   : > { %1117 = vmatmul.mubr.f32.vlgmr.msra.gmra.mrb[0].mxu1 %v834_v60  ;;  %v1177_v60 = vld [vmem:[#allocation8 + $0x588] sm:$0xff] }
 0x256   : > { %1758 = vmatpush1.bf16.msra.mxu1 %v1757_v56  ;;  %1268 = vmatprep.mubr.f32.mxu1 %v1201_v63  ;;  %v1797_v56 = vpack.c.bf16 %v1170_v54, %v1168_v11  ;;  %v1803_v63 = vpack.c.bf16 %v1179_v61, %v1177_v60  ;;  %p1995_p2 = pnand %p1994_p12, %p1988_p3 }
 0x257   : > { %1760 = vmatprep.subr.bf16.mxu1 %v1759_v57  ;;  %v1799_v57 = vpack.c.bf16 %v1175_v0, %v1173_v55 }
 0x25a   : > { %1762 = vmatpush1.bf16.msra.mxu1 %v1761_v3  ;;  %v1176_v3 = vld [vmem:[#allocation8 + $0x580] sm:$0xff] }
 0x25b   : > { %1764 = vmatprep.subr.bf16.mxu1 %v1763_v31  ;;  %v1178_v31 = vld [vmem:[#allocation8 + $0x590] sm:$0xff] }
 0x25c   : > { %v1805_v6 = vpack.c.bf16 %v1178_v31, %v1176_v3 }
 0x25e   : > { %1766 = vmatpush1.bf16.msra.mxu1 %v1765_v8  ;;  %v1180_v8 = vld [vmem:[#allocation8 + $0x5a0] sm:$0xff] }
 0x25f   : > { %1768 = vmatprep.subr.bf16.mxu1 %v1767_v9  ;;  %v1182_v9 = vld [vmem:[#allocation8 + $0x5b0] sm:$0xff] }
 0x260   : > { %v1809_v14 = vpack.c.bf16 %v1182_v9, %v1180_v8 }
 0x262   : > { %1770 = vmatpush1.bf16.msra.mxu1 %v1769_v16  ;;  %v1184_v16 = vld [vmem:[#allocation8 + $0x5c0] sm:$0xff] }
 0x263   : > { %1772 = vmatprep.subr.bf16.mxu1 %v1771_v17  ;;  %v1186_v17 = vld [vmem:[#allocation8 + $0x5d0] sm:$0xff] }
 0x264   : > { %v1813_v20 = vpack.c.bf16 %v1186_v17, %v1184_v16 }
 0x266   : > { %1774 = vmatpush1.bf16.msra.mxu1 %v1773_v22  ;;  %v1188_v22 = vld [vmem:[#allocation8 + $0x5e0] sm:$0xff] }
 0x267   : > { %1776 = vmatprep.subr.bf16.mxu1 %v1775_v23  ;;  %v1190_v23 = vld [vmem:[#allocation8 + $0x5f0] sm:$0xff] }
 0x268   : > { %v1817_v26 = vpack.c.bf16 %v1190_v23, %v1188_v22 }
 0x26a   : > { %1778 = vmatpush1.bf16.msra.mxu1 %v1777_v28  ;;  %v1197_v28 = vrot.slane %v1125_v25, 2 }
 0x26b   : > { %1780 = vmatprep.subr.bf16.mxu1 %v1779_v12 }
 0x26c   : > { %v1198_v12 = vsel %vm708_vm2, %v1196_v27, %v1197_v28 }
 0x26e   : > { %1782 = vmatpush1.bf16.msra.mxu1 %v1781_v32  ;;  %v1296_v32 = vrot.slane %v1291_v1, %v2322_v49 }
 0x26f   : > { %1784 = vmatprep.subr.bf16.mxu1 %v1783_v33 }
 0x272   : > { %1786 = vmatpush1.bf16.msra.mxu1 %v1785_v38 }
 0x273   : > { %1788 = vmatprep.subr.bf16.mxu1 %v1787_v39 }
 0x276   : > { %1790 = vmatpush1.bf16.msra.mxu1 %v1789_v44 }
 0x277   : > { %1792 = vmatprep.subr.bf16.mxu1 %v1791_v45 }
 0x27a   : > { %1794 = vmatpush1.bf16.msra.mxu1 %v1793_v52 }
 0x27b   : > { %1796 = vmatprep.subr.bf16.mxu1 %v1795_v53 }
 0x27e   : > { %1798 = vmatpush1.bf16.msra.mxu1 %v1797_v56 }
 0x27f   : > { %1800 = vmatprep.subr.bf16.mxu1 %v1799_v57 }
 0x282   : > { %1802 = vmatpush1.bf16.msra.mxu1 %v1801_v62 }
 0x283   : > { %1804 = vmatprep.subr.bf16.mxu1 %v1803_v63 }
 0x286   : > { %1806 = vmatpush1.bf16.msra.mxu1 %v1805_v6 }
 0x287   : > { %1808 = vmatprep.subr.bf16.mxu1 %v1807_v7 }
 0x28a   : > { %1810 = vmatpush1.bf16.msra.mxu1 %v1809_v14 }
 0x28b   : > { %1812 = vmatprep.subr.bf16.mxu1 %v1811_v15 }
 0x28e   : > { %1814 = vmatpush1.bf16.msra.mxu1 %v1813_v20 }
 0x28f   : > { %1816 = vmatprep.subr.bf16.mxu1 %v1815_v21 }
 0x292   : > { %1818 = vmatpush1.bf16.msra.mxu1 %v1817_v26 }
 0x295   : > { %1269 = vmatmul.mubr.f32.vlgmr.msra.gmra.mrb[0].mxu1 %v1198_v12 }
 0x368   : > { %v1270_v33 = vpop.f32.mrb[0].mxu1 }
 0x369   : > { %v1289_v35 = vmul.f32 %v1282_v2, %v1270_v33  ;;  %v1272_v36 = vpop.f32.mrb[1].mxu1 }
 0x36a   : > { %v1290_v37 = vmul.f32 %v1286_v30, %v1272_v36 }
 0x36b   : > { %v1303_v38 = vadd.f32 %v1296_v32, %v1289_v35 }
 0x36c   : > { %v1304_v39 = vadd.f32 %v1300_v34, %v1290_v37 }
 0x36d   : > { %v1305_v41 = vadd.f32 %v1897_v40, %v1303_v38 }
 0x36e   : > { %v1306_v43 = vadd.f32 %v1898_v42, %v1304_v39 }
 0x36f   : > { %v1307_v44 = vmax.f32 %v1305_v41, 0.0 }
 0x370   : > { %v1308_v49 = vmax.f32 %v1306_v43, 0.0 }
 0x371   : > { %1309 = vst [vmem:[%s323_s19] sm:$0xff] %v1307_v44 }
 0x372   : > { %1310 = vst [vmem:[%s323_s19 + $0x8] sm:$0xff] %v1308_v49 }
 0x373   : > { %1998 = shalt.err (!%p1995_p2)
}
 0x374   : > { %s1999_s12 = scalar_lea.hbm %s2358_s20, 256  ;;  %s2003_s21 = scalar_lea.hbm %s2409_s7, 512 }
 0x375   : > { %p2000_p13 = scmp.ne.s32.totalorder %s2358_s20, %s1999_s12  ;;  %p2004_p4 = scmp.lt.u32.totalorder %s2358_s20, %s2409_s7 }
 0x376   : > { %p2005_p5 = scmp.lt.u32.totalorder %s2003_s21, %s1999_s12  ;;  %p2007_p11 = scmp.lt.u32.totalorder %s1999_s12, %s2358_s20 }
 0x377   : > { %p2001_p6 = pnand %p2000_p13, %p2425_p0 }
 0x378   : > { %p2006_p8 = por %p2005_p5, %p2004_p4 }
 0x379   : > { %p2002_p10 = pneg %p2001_p6 }
 0x37a   : > { %p2008_p1 = por %p2007_p11, %p2006_p8 }
 0x37c   : > { %p2009_p3 = pnand %p2008_p1, %p2002_p10 }
 0x37e   : > { %2012 = shalt.err (!%p2009_p3)
}
 0x37f   : > { %1837 = dma.vmem_to_hbm [thread:$0]  (%p2425_p0), %s2360_s23, 256, %s2358_s20, %s1312_s28  }
 0x380 PF: > { %s1338_s30 = sand.u32 1, %s2043_s24   ;;  %p2426_p7 = scmp.ne.s32.totalorder %s2414_s8, 0 }
 0x381   : > { %p2427_p9 = scmp.ge.s32.totalorder %s2055_s27, 2  ;;  %s1339_s9 = scalar_lea.sflag [#allocation5], %s1338_s30 }
 0x383   : > { %p1851_p12 = pnand %p2427_p9, %p2426_p7 }
 0x385   : > { %2038 = dma.done.wait (!%p1851_p12), %s1339_s9, 256  }
 0x386   : > { %2040 = vsyncadd (!%p1851_p12), %s1339_s9, 4294967040  ;;  %p21_p2 = scmp.ge.s32.totalorder %s2214_s13, 4   ;;  %s2428_s24 = smov %s2047_s25 }
 0x387   : > { %s2429_s25 = smov %s2051_s26  ;;  %s2430_s26 = smov %s2230_s17 }
 0x388   : > { %s2431_s27 = smov %s2214_s13  ;;  %23 = sbr.rel (!%p21_p2) target bundleno = 6 (0x6), region = 106 }
 0x38f   :  { %1344 = vsyncpa [#allocation4], 1 }
 0x390   :  { %1346 = vsyncpa [#allocation4 + $0x1], 1 }
 0x391   :  { %1347 = vsyncpa [#allocation7], 1 }
 0x392   :  { %1348 = vsyncpa [#allocation5], 1 }
 0x393   :  { %1350 = vsyncpa [#allocation5 + $0x1], 1 }

</bundles_post_ra>
